<compile_context>
chip_gen: v5e
topology: v5e:2x2
jax: 0.10.0
libtpu: 0.0.40
codegen_flags: <defaults>
</compile_context>

<pallas_src>
import functools

import jax
import jax.numpy as jnp
from jax.experimental import pallas as pl
from jax.experimental.pallas import tpu as pltpu

HIDDEN = 32               # self.hiddenSize
LANE = 128                # TPU lane width
SUBLANE = 8               # f32 sublane height
DEFAULT_TILE_ROWS = 256   # 256*128 = 32768 batch elems / grid step (~128 KiB f32)


def _mlp_kernel(x_ref, w1_ref, w2_ref, o_ref):
    # x_ref: (tile_rows, 128) VMEM tile, batch elements packed densely on lanes.
    # w1_ref / w2_ref: (32,) f32 in SMEM (flattened W1 / W2).
    x = x_ref[...]
    acc = jnp.zeros_like(x)
    for h in range(HIDDEN):                   # statically unrolled (32 steps)
        z = x * w1_ref[h]                     # VPU scalar-broadcast multiply
        z2 = 1.0 / (1.0 + jnp.exp(-z))        # sigmoid: EUP exp + VPU
        acc = acc + z2 * w2_ref[h]            # VPU scalar-broadcast mul-add
    o_ref[...] = acc                          # full 128-lane unmasked stores


@functools.partial(jax.jit, static_argnames=("tile_rows",))
def neural_network_forward(X, W1, W2, tile_rows=DEFAULT_TILE_ROWS):
    """X: (N, 1) f32, W1: (1, 32) f32, W2: (32, 1) f32  ->  (N, 1) f32."""
    X = jnp.asarray(X, jnp.float32)
    w1 = jnp.asarray(W1, jnp.float32).reshape(HIDDEN)    # (32,)
    w2 = jnp.asarray(W2, jnp.float32).reshape(HIDDEN)    # (32,)
    N = X.shape[0]
    x_flat = X.reshape(N)                                 # inputSize == 1

    # Lane-dense slab: batch on (sublane, lane).  Rows padded to a sublane
    # multiple; small N -> a single (8, 128) tile, large N -> fixed-size
    # tiles over a "parallel" grid axis.
    rows = pl.cdiv(N, LANE)
    if rows <= tile_rows:
        tile_rows = max(SUBLANE, pl.cdiv(rows, SUBLANE) * SUBLANE)
    total_rows = pl.cdiv(rows, tile_rows) * tile_rows
    n_pad = total_rows * LANE

    x_slab = (
        jnp.zeros((n_pad,), jnp.float32).at[:N].set(x_flat)
        .reshape(total_rows, LANE)
    )

    out_slab = pl.pallas_call(
        _mlp_kernel,
        out_shape=jax.ShapeDtypeStruct((total_rows, LANE), jnp.float32),
        grid=(total_rows // tile_rows,),
        in_specs=[
            pl.BlockSpec((tile_rows, LANE), lambda i: (i, 0)),
            pl.BlockSpec(memory_space=pltpu.MemorySpace.SMEM),   # W1 (32 scalars)
            pl.BlockSpec(memory_space=pltpu.MemorySpace.SMEM),   # W2 (32 scalars)
        ],
        out_specs=pl.BlockSpec((tile_rows, LANE), lambda i: (i, 0)),
        compiler_params=pltpu.CompilerParams(
            dimension_semantics=("parallel",),
        ),
    )(x_slab, w1, w2)

    # Padded tail elements hold sigmoid(0)*sum(W2); slice them off.
    return out_slab.reshape(-1)[:N].reshape(N, 1)


def _reference_forward(X, W1, W2):
    z = X @ W1
    z2 = 1.0 / (1.0 + jnp.exp(-z))
    return z2 @ W2


if __name__ == "__main__":
    key = jax.random.PRNGKey(0)
    k_w1, k_w2, k_x = jax.random.split(key, 3)

    # Module shapes: inputSize=1, hiddenSize=32, outputSize=1.
    W1 = jax.random.normal(k_w1, (1, HIDDEN), dtype=jnp.float32)   # torch.randn(1, 32)
    W2 = jax.random.normal(k_w2, (HIDDEN, 1), dtype=jnp.float32)   # torch.randn(32, 1)

    # (a) the module's own X: 11 points in [0, 1]  -> single (8, 128) tile.
    X_small = jnp.linspace(0.0, 1.0, 11, dtype=jnp.float32).reshape(11, 1)
    out_small = jax.block_until_ready(neural_network_forward(X_small, W1, W2))
    ref_small = _reference_forward(X_small, W1, W2)
    assert out_small.shape == (11, 1)
    assert jnp.allclose(out_small, ref_small, atol=1e-5, rtol=1e-5), \
        "Pallas kernel mismatch vs reference (small batch)"

    # (b) a modest batch spanning two grid tiles (exercises the pipelined grid).
    N_big = 33000
    X_big = jax.random.uniform(k_x, (N_big, 1), dtype=jnp.float32)
    out_big = jax.block_until_ready(neural_network_forward(X_big, W1, W2))
    ref_big = _reference_forward(X_big, W1, W2)
    assert out_big.shape == (N_big, 1)
    assert jnp.allclose(out_big, ref_big, atol=1e-5, rtol=1e-5), \
        "Pallas kernel mismatch vs reference (tiled batch)"

    print("KERNEL_OK")
</pallas_src>

<mosaic_0001>
module attributes {stable_mosaic.version = 11 : i64} {
  func.func @_mlp_kernel(%arg0: i32, %arg1: memref<8x128xf32, #tpu.memory_space<vmem>>, %arg2: memref<32xf32, #tpu.memory_space<smem>>, %arg3: memref<32xf32, #tpu.memory_space<smem>>, %arg4: memref<8x128xf32, #tpu.memory_space<vmem>>) attributes {dimension_semantics = [#tpu.dimension_semantics<parallel>], iteration_bounds = array<i64: 1>, scalar_prefetch = 0 : i64, scratch_operands = 0 : i64, tpu.core_type = #tpu.core_type<tc>, window_params = [{transform_indices = @transform_0, window_bounds = array<i64: 8, 128>}, {transform_indices = @transform_1, window_bounds = array<i64: 32>}, {transform_indices = @transform_2, window_bounds = array<i64: 32>}, {transform_indices = @transform_3, window_bounds = array<i64: 8, 128>}]} {
    %c0 = arith.constant 0 : index
    %c0_0 = arith.constant 0 : index
    %0 = vector.load %arg1[%c0, %c0_0] : memref<8x128xf32, #tpu.memory_space<vmem>>, vector<8x128xf32>
    %cst = arith.constant 0.000000e+00 : f32
    %1 = vector.broadcast %cst : f32 to vector<8x128xf32>
    %c0_1 = arith.constant 0 : index
    %2 = memref.load %arg2[%c0_1] : memref<32xf32, #tpu.memory_space<smem>>
    %3 = vector.broadcast %2 : f32 to vector<8x128xf32>
    %4 = arith.mulf %0, %3 : vector<8x128xf32>
    %cst_2 = arith.constant 0.000000e+00 : f32
    %5 = vector.broadcast %cst_2 : f32 to vector<8x128xf32>
    %6 = arith.subf %5, %4 : vector<8x128xf32>
    %7 = math.exp %6 : vector<8x128xf32>
    %cst_3 = arith.constant 1.000000e+00 : f32
    %8 = vector.broadcast %cst_3 : f32 to vector<8x128xf32>
    %9 = arith.addf %8, %7 : vector<8x128xf32>
    %cst_4 = arith.constant 1.000000e+00 : f32
    %10 = vector.broadcast %cst_4 : f32 to vector<8x128xf32>
    %11 = arith.divf %10, %9 : vector<8x128xf32>
    %c0_5 = arith.constant 0 : index
    %12 = memref.load %arg3[%c0_5] : memref<32xf32, #tpu.memory_space<smem>>
    %13 = vector.broadcast %12 : f32 to vector<8x128xf32>
    %14 = arith.mulf %11, %13 : vector<8x128xf32>
    %15 = arith.addf %1, %14 : vector<8x128xf32>
    %c1 = arith.constant 1 : index
    %16 = memref.load %arg2[%c1] : memref<32xf32, #tpu.memory_space<smem>>
    %17 = vector.broadcast %16 : f32 to vector<8x128xf32>
    %18 = arith.mulf %0, %17 : vector<8x128xf32>
    %cst_6 = arith.constant 0.000000e+00 : f32
    %19 = vector.broadcast %cst_6 : f32 to vector<8x128xf32>
    %20 = arith.subf %19, %18 : vector<8x128xf32>
    %21 = math.exp %20 : vector<8x128xf32>
    %cst_7 = arith.constant 1.000000e+00 : f32
    %22 = vector.broadcast %cst_7 : f32 to vector<8x128xf32>
    %23 = arith.addf %22, %21 : vector<8x128xf32>
    %cst_8 = arith.constant 1.000000e+00 : f32
    %24 = vector.broadcast %cst_8 : f32 to vector<8x128xf32>
    %25 = arith.divf %24, %23 : vector<8x128xf32>
    %c1_9 = arith.constant 1 : index
    %26 = memref.load %arg3[%c1_9] : memref<32xf32, #tpu.memory_space<smem>>
    %27 = vector.broadcast %26 : f32 to vector<8x128xf32>
    %28 = arith.mulf %25, %27 : vector<8x128xf32>
    %29 = arith.addf %15, %28 : vector<8x128xf32>
    %c2 = arith.constant 2 : index
    %30 = memref.load %arg2[%c2] : memref<32xf32, #tpu.memory_space<smem>>
    %31 = vector.broadcast %30 : f32 to vector<8x128xf32>
    %32 = arith.mulf %0, %31 : vector<8x128xf32>
    %cst_10 = arith.constant 0.000000e+00 : f32
    %33 = vector.broadcast %cst_10 : f32 to vector<8x128xf32>
    %34 = arith.subf %33, %32 : vector<8x128xf32>
    %35 = math.exp %34 : vector<8x128xf32>
    %cst_11 = arith.constant 1.000000e+00 : f32
    %36 = vector.broadcast %cst_11 : f32 to vector<8x128xf32>
    %37 = arith.addf %36, %35 : vector<8x128xf32>
    %cst_12 = arith.constant 1.000000e+00 : f32
    %38 = vector.broadcast %cst_12 : f32 to vector<8x128xf32>
    %39 = arith.divf %38, %37 : vector<8x128xf32>
    %c2_13 = arith.constant 2 : index
    %40 = memref.load %arg3[%c2_13] : memref<32xf32, #tpu.memory_space<smem>>
    %41 = vector.broadcast %40 : f32 to vector<8x128xf32>
    %42 = arith.mulf %39, %41 : vector<8x128xf32>
    %43 = arith.addf %29, %42 : vector<8x128xf32>
    %c3 = arith.constant 3 : index
    %44 = memref.load %arg2[%c3] : memref<32xf32, #tpu.memory_space<smem>>
    %45 = vector.broadcast %44 : f32 to vector<8x128xf32>
    %46 = arith.mulf %0, %45 : vector<8x128xf32>
    %cst_14 = arith.constant 0.000000e+00 : f32
    %47 = vector.broadcast %cst_14 : f32 to vector<8x128xf32>
    %48 = arith.subf %47, %46 : vector<8x128xf32>
    %49 = math.exp %48 : vector<8x128xf32>
    %cst_15 = arith.constant 1.000000e+00 : f32
    %50 = vector.broadcast %cst_15 : f32 to vector<8x128xf32>
    %51 = arith.addf %50, %49 : vector<8x128xf32>
    %cst_16 = arith.constant 1.000000e+00 : f32
    %52 = vector.broadcast %cst_16 : f32 to vector<8x128xf32>
    %53 = arith.divf %52, %51 : vector<8x128xf32>
    %c3_17 = arith.constant 3 : index
    %54 = memref.load %arg3[%c3_17] : memref<32xf32, #tpu.memory_space<smem>>
    %55 = vector.broadcast %54 : f32 to vector<8x128xf32>
    %56 = arith.mulf %53, %55 : vector<8x128xf32>
    %57 = arith.addf %43, %56 : vector<8x128xf32>
    %c4 = arith.constant 4 : index
    %58 = memref.load %arg2[%c4] : memref<32xf32, #tpu.memory_space<smem>>
    %59 = vector.broadcast %58 : f32 to vector<8x128xf32>
    %60 = arith.mulf %0, %59 : vector<8x128xf32>
    %cst_18 = arith.constant 0.000000e+00 : f32
    %61 = vector.broadcast %cst_18 : f32 to vector<8x128xf32>
    %62 = arith.subf %61, %60 : vector<8x128xf32>
    %63 = math.exp %62 : vector<8x128xf32>
    %cst_19 = arith.constant 1.000000e+00 : f32
    %64 = vector.broadcast %cst_19 : f32 to vector<8x128xf32>
    %65 = arith.addf %64, %63 : vector<8x128xf32>
    %cst_20 = arith.constant 1.000000e+00 : f32
    %66 = vector.broadcast %cst_20 : f32 to vector<8x128xf32>
    %67 = arith.divf %66, %65 : vector<8x128xf32>
    %c4_21 = arith.constant 4 : index
    %68 = memref.load %arg3[%c4_21] : memref<32xf32, #tpu.memory_space<smem>>
    %69 = vector.broadcast %68 : f32 to vector<8x128xf32>
    %70 = arith.mulf %67, %69 : vector<8x128xf32>
    %71 = arith.addf %57, %70 : vector<8x128xf32>
    %c5 = arith.constant 5 : index
    %72 = memref.load %arg2[%c5] : memref<32xf32, #tpu.memory_space<smem>>
    %73 = vector.broadcast %72 : f32 to vector<8x128xf32>
    %74 = arith.mulf %0, %73 : vector<8x128xf32>
    %cst_22 = arith.constant 0.000000e+00 : f32
    %75 = vector.broadcast %cst_22 : f32 to vector<8x128xf32>
    %76 = arith.subf %75, %74 : vector<8x128xf32>
    %77 = math.exp %76 : vector<8x128xf32>
    %cst_23 = arith.constant 1.000000e+00 : f32
    %78 = vector.broadcast %cst_23 : f32 to vector<8x128xf32>
    %79 = arith.addf %78, %77 : vector<8x128xf32>
    %cst_24 = arith.constant 1.000000e+00 : f32
    %80 = vector.broadcast %cst_24 : f32 to vector<8x128xf32>
    %81 = arith.divf %80, %79 : vector<8x128xf32>
    %c5_25 = arith.constant 5 : index
    %82 = memref.load %arg3[%c5_25] : memref<32xf32, #tpu.memory_space<smem>>
    %83 = vector.broadcast %82 : f32 to vector<8x128xf32>
    %84 = arith.mulf %81, %83 : vector<8x128xf32>
    %85 = arith.addf %71, %84 : vector<8x128xf32>
    %c6 = arith.constant 6 : index
    %86 = memref.load %arg2[%c6] : memref<32xf32, #tpu.memory_space<smem>>
    %87 = vector.broadcast %86 : f32 to vector<8x128xf32>
    %88 = arith.mulf %0, %87 : vector<8x128xf32>
    %cst_26 = arith.constant 0.000000e+00 : f32
    %89 = vector.broadcast %cst_26 : f32 to vector<8x128xf32>
    %90 = arith.subf %89, %88 : vector<8x128xf32>
    %91 = math.exp %90 : vector<8x128xf32>
    %cst_27 = arith.constant 1.000000e+00 : f32
    %92 = vector.broadcast %cst_27 : f32 to vector<8x128xf32>
    %93 = arith.addf %92, %91 : vector<8x128xf32>
    %cst_28 = arith.constant 1.000000e+00 : f32
    %94 = vector.broadcast %cst_28 : f32 to vector<8x128xf32>
    %95 = arith.divf %94, %93 : vector<8x128xf32>
    %c6_29 = arith.constant 6 : index
    %96 = memref.load %arg3[%c6_29] : memref<32xf32, #tpu.memory_space<smem>>
    %97 = vector.broadcast %96 : f32 to vector<8x128xf32>
    %98 = arith.mulf %95, %97 : vector<8x128xf32>
    %99 = arith.addf %85, %98 : vector<8x128xf32>
    %c7 = arith.constant 7 : index
    %100 = memref.load %arg2[%c7] : memref<32xf32, #tpu.memory_space<smem>>
    %101 = vector.broadcast %100 : f32 to vector<8x128xf32>
    %102 = arith.mulf %0, %101 : vector<8x128xf32>
    %cst_30 = arith.constant 0.000000e+00 : f32
    %103 = vector.broadcast %cst_30 : f32 to vector<8x128xf32>
    %104 = arith.subf %103, %102 : vector<8x128xf32>
    %105 = math.exp %104 : vector<8x128xf32>
    %cst_31 = arith.constant 1.000000e+00 : f32
    %106 = vector.broadcast %cst_31 : f32 to vector<8x128xf32>
    %107 = arith.addf %106, %105 : vector<8x128xf32>
    %cst_32 = arith.constant 1.000000e+00 : f32
    %108 = vector.broadcast %cst_32 : f32 to vector<8x128xf32>
    %109 = arith.divf %108, %107 : vector<8x128xf32>
    %c7_33 = arith.constant 7 : index
    %110 = memref.load %arg3[%c7_33] : memref<32xf32, #tpu.memory_space<smem>>
    %111 = vector.broadcast %110 : f32 to vector<8x128xf32>
    %112 = arith.mulf %109, %111 : vector<8x128xf32>
    %113 = arith.addf %99, %112 : vector<8x128xf32>
    %c8 = arith.constant 8 : index
    %114 = memref.load %arg2[%c8] : memref<32xf32, #tpu.memory_space<smem>>
    %115 = vector.broadcast %114 : f32 to vector<8x128xf32>
    %116 = arith.mulf %0, %115 : vector<8x128xf32>
    %cst_34 = arith.constant 0.000000e+00 : f32
    %117 = vector.broadcast %cst_34 : f32 to vector<8x128xf32>
    %118 = arith.subf %117, %116 : vector<8x128xf32>
    %119 = math.exp %118 : vector<8x128xf32>
    %cst_35 = arith.constant 1.000000e+00 : f32
    %120 = vector.broadcast %cst_35 : f32 to vector<8x128xf32>
    %121 = arith.addf %120, %119 : vector<8x128xf32>
    %cst_36 = arith.constant 1.000000e+00 : f32
    %122 = vector.broadcast %cst_36 : f32 to vector<8x128xf32>
    %123 = arith.divf %122, %121 : vector<8x128xf32>
    %c8_37 = arith.constant 8 : index
    %124 = memref.load %arg3[%c8_37] : memref<32xf32, #tpu.memory_space<smem>>
    %125 = vector.broadcast %124 : f32 to vector<8x128xf32>
    %126 = arith.mulf %123, %125 : vector<8x128xf32>
    %127 = arith.addf %113, %126 : vector<8x128xf32>
    %c9 = arith.constant 9 : index
    %128 = memref.load %arg2[%c9] : memref<32xf32, #tpu.memory_space<smem>>
    %129 = vector.broadcast %128 : f32 to vector<8x128xf32>
    %130 = arith.mulf %0, %129 : vector<8x128xf32>
    %cst_38 = arith.constant 0.000000e+00 : f32
    %131 = vector.broadcast %cst_38 : f32 to vector<8x128xf32>
    %132 = arith.subf %131, %130 : vector<8x128xf32>
    %133 = math.exp %132 : vector<8x128xf32>
    %cst_39 = arith.constant 1.000000e+00 : f32
    %134 = vector.broadcast %cst_39 : f32 to vector<8x128xf32>
    %135 = arith.addf %134, %133 : vector<8x128xf32>
    %cst_40 = arith.constant 1.000000e+00 : f32
    %136 = vector.broadcast %cst_40 : f32 to vector<8x128xf32>
    %137 = arith.divf %136, %135 : vector<8x128xf32>
    %c9_41 = arith.constant 9 : index
    %138 = memref.load %arg3[%c9_41] : memref<32xf32, #tpu.memory_space<smem>>
    %139 = vector.broadcast %138 : f32 to vector<8x128xf32>
    %140 = arith.mulf %137, %139 : vector<8x128xf32>
    %141 = arith.addf %127, %140 : vector<8x128xf32>
    %c10 = arith.constant 10 : index
    %142 = memref.load %arg2[%c10] : memref<32xf32, #tpu.memory_space<smem>>
    %143 = vector.broadcast %142 : f32 to vector<8x128xf32>
    %144 = arith.mulf %0, %143 : vector<8x128xf32>
    %cst_42 = arith.constant 0.000000e+00 : f32
    %145 = vector.broadcast %cst_42 : f32 to vector<8x128xf32>
    %146 = arith.subf %145, %144 : vector<8x128xf32>
    %147 = math.exp %146 : vector<8x128xf32>
    %cst_43 = arith.constant 1.000000e+00 : f32
    %148 = vector.broadcast %cst_43 : f32 to vector<8x128xf32>
    %149 = arith.addf %148, %147 : vector<8x128xf32>
    %cst_44 = arith.constant 1.000000e+00 : f32
    %150 = vector.broadcast %cst_44 : f32 to vector<8x128xf32>
    %151 = arith.divf %150, %149 : vector<8x128xf32>
    %c10_45 = arith.constant 10 : index
    %152 = memref.load %arg3[%c10_45] : memref<32xf32, #tpu.memory_space<smem>>
    %153 = vector.broadcast %152 : f32 to vector<8x128xf32>
    %154 = arith.mulf %151, %153 : vector<8x128xf32>
    %155 = arith.addf %141, %154 : vector<8x128xf32>
    %c11 = arith.constant 11 : index
    %156 = memref.load %arg2[%c11] : memref<32xf32, #tpu.memory_space<smem>>
    %157 = vector.broadcast %156 : f32 to vector<8x128xf32>
    %158 = arith.mulf %0, %157 : vector<8x128xf32>
    %cst_46 = arith.constant 0.000000e+00 : f32
    %159 = vector.broadcast %cst_46 : f32 to vector<8x128xf32>
    %160 = arith.subf %159, %158 : vector<8x128xf32>
    %161 = math.exp %160 : vector<8x128xf32>
    %cst_47 = arith.constant 1.000000e+00 : f32
    %162 = vector.broadcast %cst_47 : f32 to vector<8x128xf32>
    %163 = arith.addf %162, %161 : vector<8x128xf32>
    %cst_48 = arith.constant 1.000000e+00 : f32
    %164 = vector.broadcast %cst_48 : f32 to vector<8x128xf32>
    %165 = arith.divf %164, %163 : vector<8x128xf32>
    %c11_49 = arith.constant 11 : index
    %166 = memref.load %arg3[%c11_49] : memref<32xf32, #tpu.memory_space<smem>>
    %167 = vector.broadcast %166 : f32 to vector<8x128xf32>
    %168 = arith.mulf %165, %167 : vector<8x128xf32>
    %169 = arith.addf %155, %168 : vector<8x128xf32>
    %c12 = arith.constant 12 : index
    %170 = memref.load %arg2[%c12] : memref<32xf32, #tpu.memory_space<smem>>
    %171 = vector.broadcast %170 : f32 to vector<8x128xf32>
    %172 = arith.mulf %0, %171 : vector<8x128xf32>
    %cst_50 = arith.constant 0.000000e+00 : f32
    %173 = vector.broadcast %cst_50 : f32 to vector<8x128xf32>
    %174 = arith.subf %173, %172 : vector<8x128xf32>
    %175 = math.exp %174 : vector<8x128xf32>
    %cst_51 = arith.constant 1.000000e+00 : f32
    %176 = vector.broadcast %cst_51 : f32 to vector<8x128xf32>
    %177 = arith.addf %176, %175 : vector<8x128xf32>
    %cst_52 = arith.constant 1.000000e+00 : f32
    %178 = vector.broadcast %cst_52 : f32 to vector<8x128xf32>
    %179 = arith.divf %178, %177 : vector<8x128xf32>
    %c12_53 = arith.constant 12 : index
    %180 = memref.load %arg3[%c12_53] : memref<32xf32, #tpu.memory_space<smem>>
    %181 = vector.broadcast %180 : f32 to vector<8x128xf32>
    %182 = arith.mulf %179, %181 : vector<8x128xf32>
    %183 = arith.addf %169, %182 : vector<8x128xf32>
    %c13 = arith.constant 13 : index
    %184 = memref.load %arg2[%c13] : memref<32xf32, #tpu.memory_space<smem>>
    %185 = vector.broadcast %184 : f32 to vector<8x128xf32>
    %186 = arith.mulf %0, %185 : vector<8x128xf32>
    %cst_54 = arith.constant 0.000000e+00 : f32
    %187 = vector.broadcast %cst_54 : f32 to vector<8x128xf32>
    %188 = arith.subf %187, %186 : vector<8x128xf32>
    %189 = math.exp %188 : vector<8x128xf32>
    %cst_55 = arith.constant 1.000000e+00 : f32
    %190 = vector.broadcast %cst_55 : f32 to vector<8x128xf32>
    %191 = arith.addf %190, %189 : vector<8x128xf32>
    %cst_56 = arith.constant 1.000000e+00 : f32
    %192 = vector.broadcast %cst_56 : f32 to vector<8x128xf32>
    %193 = arith.divf %192, %191 : vector<8x128xf32>
    %c13_57 = arith.constant 13 : index
    %194 = memref.load %arg3[%c13_57] : memref<32xf32, #tpu.memory_space<smem>>
    %195 = vector.broadcast %194 : f32 to vector<8x128xf32>
    %196 = arith.mulf %193, %195 : vector<8x128xf32>
    %197 = arith.addf %183, %196 : vector<8x128xf32>
    %c14 = arith.constant 14 : index
    %198 = memref.load %arg2[%c14] : memref<32xf32, #tpu.memory_space<smem>>
    %199 = vector.broadcast %198 : f32 to vector<8x128xf32>
    %200 = arith.mulf %0, %199 : vector<8x128xf32>
    %cst_58 = arith.constant 0.000000e+00 : f32
    %201 = vector.broadcast %cst_58 : f32 to vector<8x128xf32>
    %202 = arith.subf %201, %200 : vector<8x128xf32>
    %203 = math.exp %202 : vector<8x128xf32>
    %cst_59 = arith.constant 1.000000e+00 : f32
    %204 = vector.broadcast %cst_59 : f32 to vector<8x128xf32>
    %205 = arith.addf %204, %203 : vector<8x128xf32>
    %cst_60 = arith.constant 1.000000e+00 : f32
    %206 = vector.broadcast %cst_60 : f32 to vector<8x128xf32>
    %207 = arith.divf %206, %205 : vector<8x128xf32>
    %c14_61 = arith.constant 14 : index
    %208 = memref.load %arg3[%c14_61] : memref<32xf32, #tpu.memory_space<smem>>
    %209 = vector.broadcast %208 : f32 to vector<8x128xf32>
    %210 = arith.mulf %207, %209 : vector<8x128xf32>
    %211 = arith.addf %197, %210 : vector<8x128xf32>
    %c15 = arith.constant 15 : index
    %212 = memref.load %arg2[%c15] : memref<32xf32, #tpu.memory_space<smem>>
    %213 = vector.broadcast %212 : f32 to vector<8x128xf32>
    %214 = arith.mulf %0, %213 : vector<8x128xf32>
    %cst_62 = arith.constant 0.000000e+00 : f32
    %215 = vector.broadcast %cst_62 : f32 to vector<8x128xf32>
    %216 = arith.subf %215, %214 : vector<8x128xf32>
    %217 = math.exp %216 : vector<8x128xf32>
    %cst_63 = arith.constant 1.000000e+00 : f32
    %218 = vector.broadcast %cst_63 : f32 to vector<8x128xf32>
    %219 = arith.addf %218, %217 : vector<8x128xf32>
    %cst_64 = arith.constant 1.000000e+00 : f32
    %220 = vector.broadcast %cst_64 : f32 to vector<8x128xf32>
    %221 = arith.divf %220, %219 : vector<8x128xf32>
    %c15_65 = arith.constant 15 : index
    %222 = memref.load %arg3[%c15_65] : memref<32xf32, #tpu.memory_space<smem>>
    %223 = vector.broadcast %222 : f32 to vector<8x128xf32>
    %224 = arith.mulf %221, %223 : vector<8x128xf32>
    %225 = arith.addf %211, %224 : vector<8x128xf32>
    %c16 = arith.constant 16 : index
    %226 = memref.load %arg2[%c16] : memref<32xf32, #tpu.memory_space<smem>>
    %227 = vector.broadcast %226 : f32 to vector<8x128xf32>
    %228 = arith.mulf %0, %227 : vector<8x128xf32>
    %cst_66 = arith.constant 0.000000e+00 : f32
    %229 = vector.broadcast %cst_66 : f32 to vector<8x128xf32>
    %230 = arith.subf %229, %228 : vector<8x128xf32>
    %231 = math.exp %230 : vector<8x128xf32>
    %cst_67 = arith.constant 1.000000e+00 : f32
    %232 = vector.broadcast %cst_67 : f32 to vector<8x128xf32>
    %233 = arith.addf %232, %231 : vector<8x128xf32>
    %cst_68 = arith.constant 1.000000e+00 : f32
    %234 = vector.broadcast %cst_68 : f32 to vector<8x128xf32>
    %235 = arith.divf %234, %233 : vector<8x128xf32>
    %c16_69 = arith.constant 16 : index
    %236 = memref.load %arg3[%c16_69] : memref<32xf32, #tpu.memory_space<smem>>
    %237 = vector.broadcast %236 : f32 to vector<8x128xf32>
    %238 = arith.mulf %235, %237 : vector<8x128xf32>
    %239 = arith.addf %225, %238 : vector<8x128xf32>
    %c17 = arith.constant 17 : index
    %240 = memref.load %arg2[%c17] : memref<32xf32, #tpu.memory_space<smem>>
    %241 = vector.broadcast %240 : f32 to vector<8x128xf32>
    %242 = arith.mulf %0, %241 : vector<8x128xf32>
    %cst_70 = arith.constant 0.000000e+00 : f32
    %243 = vector.broadcast %cst_70 : f32 to vector<8x128xf32>
    %244 = arith.subf %243, %242 : vector<8x128xf32>
    %245 = math.exp %244 : vector<8x128xf32>
    %cst_71 = arith.constant 1.000000e+00 : f32
    %246 = vector.broadcast %cst_71 : f32 to vector<8x128xf32>
    %247 = arith.addf %246, %245 : vector<8x128xf32>
    %cst_72 = arith.constant 1.000000e+00 : f32
    %248 = vector.broadcast %cst_72 : f32 to vector<8x128xf32>
    %249 = arith.divf %248, %247 : vector<8x128xf32>
    %c17_73 = arith.constant 17 : index
    %250 = memref.load %arg3[%c17_73] : memref<32xf32, #tpu.memory_space<smem>>
    %251 = vector.broadcast %250 : f32 to vector<8x128xf32>
    %252 = arith.mulf %249, %251 : vector<8x128xf32>
    %253 = arith.addf %239, %252 : vector<8x128xf32>
    %c18 = arith.constant 18 : index
    %254 = memref.load %arg2[%c18] : memref<32xf32, #tpu.memory_space<smem>>
    %255 = vector.broadcast %254 : f32 to vector<8x128xf32>
    %256 = arith.mulf %0, %255 : vector<8x128xf32>
    %cst_74 = arith.constant 0.000000e+00 : f32
    %257 = vector.broadcast %cst_74 : f32 to vector<8x128xf32>
    %258 = arith.subf %257, %256 : vector<8x128xf32>
    %259 = math.exp %258 : vector<8x128xf32>
    %cst_75 = arith.constant 1.000000e+00 : f32
    %260 = vector.broadcast %cst_75 : f32 to vector<8x128xf32>
    %261 = arith.addf %260, %259 : vector<8x128xf32>
    %cst_76 = arith.constant 1.000000e+00 : f32
    %262 = vector.broadcast %cst_76 : f32 to vector<8x128xf32>
    %263 = arith.divf %262, %261 : vector<8x128xf32>
    %c18_77 = arith.constant 18 : index
    %264 = memref.load %arg3[%c18_77] : memref<32xf32, #tpu.memory_space<smem>>
    %265 = vector.broadcast %264 : f32 to vector<8x128xf32>
    %266 = arith.mulf %263, %265 : vector<8x128xf32>
    %267 = arith.addf %253, %266 : vector<8x128xf32>
    %c19 = arith.constant 19 : index
    %268 = memref.load %arg2[%c19] : memref<32xf32, #tpu.memory_space<smem>>
    %269 = vector.broadcast %268 : f32 to vector<8x128xf32>
    %270 = arith.mulf %0, %269 : vector<8x128xf32>
    %cst_78 = arith.constant 0.000000e+00 : f32
    %271 = vector.broadcast %cst_78 : f32 to vector<8x128xf32>
    %272 = arith.subf %271, %270 : vector<8x128xf32>
    %273 = math.exp %272 : vector<8x128xf32>
    %cst_79 = arith.constant 1.000000e+00 : f32
    %274 = vector.broadcast %cst_79 : f32 to vector<8x128xf32>
    %275 = arith.addf %274, %273 : vector<8x128xf32>
    %cst_80 = arith.constant 1.000000e+00 : f32
    %276 = vector.broadcast %cst_80 : f32 to vector<8x128xf32>
    %277 = arith.divf %276, %275 : vector<8x128xf32>
    %c19_81 = arith.constant 19 : index
    %278 = memref.load %arg3[%c19_81] : memref<32xf32, #tpu.memory_space<smem>>
    %279 = vector.broadcast %278 : f32 to vector<8x128xf32>
    %280 = arith.mulf %277, %279 : vector<8x128xf32>
    %281 = arith.addf %267, %280 : vector<8x128xf32>
    %c20 = arith.constant 20 : index
    %282 = memref.load %arg2[%c20] : memref<32xf32, #tpu.memory_space<smem>>
    %283 = vector.broadcast %282 : f32 to vector<8x128xf32>
    %284 = arith.mulf %0, %283 : vector<8x128xf32>
    %cst_82 = arith.constant 0.000000e+00 : f32
    %285 = vector.broadcast %cst_82 : f32 to vector<8x128xf32>
    %286 = arith.subf %285, %284 : vector<8x128xf32>
    %287 = math.exp %286 : vector<8x128xf32>
    %cst_83 = arith.constant 1.000000e+00 : f32
    %288 = vector.broadcast %cst_83 : f32 to vector<8x128xf32>
    %289 = arith.addf %288, %287 : vector<8x128xf32>
    %cst_84 = arith.constant 1.000000e+00 : f32
    %290 = vector.broadcast %cst_84 : f32 to vector<8x128xf32>
    %291 = arith.divf %290, %289 : vector<8x128xf32>
    %c20_85 = arith.constant 20 : index
    %292 = memref.load %arg3[%c20_85] : memref<32xf32, #tpu.memory_space<smem>>
    %293 = vector.broadcast %292 : f32 to vector<8x128xf32>
    %294 = arith.mulf %291, %293 : vector<8x128xf32>
    %295 = arith.addf %281, %294 : vector<8x128xf32>
    %c21 = arith.constant 21 : index
    %296 = memref.load %arg2[%c21] : memref<32xf32, #tpu.memory_space<smem>>
    %297 = vector.broadcast %296 : f32 to vector<8x128xf32>
    %298 = arith.mulf %0, %297 : vector<8x128xf32>
    %cst_86 = arith.constant 0.000000e+00 : f32
    %299 = vector.broadcast %cst_86 : f32 to vector<8x128xf32>
    %300 = arith.subf %299, %298 : vector<8x128xf32>
    %301 = math.exp %300 : vector<8x128xf32>
    %cst_87 = arith.constant 1.000000e+00 : f32
    %302 = vector.broadcast %cst_87 : f32 to vector<8x128xf32>
    %303 = arith.addf %302, %301 : vector<8x128xf32>
    %cst_88 = arith.constant 1.000000e+00 : f32
    %304 = vector.broadcast %cst_88 : f32 to vector<8x128xf32>
    %305 = arith.divf %304, %303 : vector<8x128xf32>
    %c21_89 = arith.constant 21 : index
    %306 = memref.load %arg3[%c21_89] : memref<32xf32, #tpu.memory_space<smem>>
    %307 = vector.broadcast %306 : f32 to vector<8x128xf32>
    %308 = arith.mulf %305, %307 : vector<8x128xf32>
    %309 = arith.addf %295, %308 : vector<8x128xf32>
    %c22 = arith.constant 22 : index
    %310 = memref.load %arg2[%c22] : memref<32xf32, #tpu.memory_space<smem>>
    %311 = vector.broadcast %310 : f32 to vector<8x128xf32>
    %312 = arith.mulf %0, %311 : vector<8x128xf32>
    %cst_90 = arith.constant 0.000000e+00 : f32
    %313 = vector.broadcast %cst_90 : f32 to vector<8x128xf32>
    %314 = arith.subf %313, %312 : vector<8x128xf32>
    %315 = math.exp %314 : vector<8x128xf32>
    %cst_91 = arith.constant 1.000000e+00 : f32
    %316 = vector.broadcast %cst_91 : f32 to vector<8x128xf32>
    %317 = arith.addf %316, %315 : vector<8x128xf32>
    %cst_92 = arith.constant 1.000000e+00 : f32
    %318 = vector.broadcast %cst_92 : f32 to vector<8x128xf32>
    %319 = arith.divf %318, %317 : vector<8x128xf32>
    %c22_93 = arith.constant 22 : index
    %320 = memref.load %arg3[%c22_93] : memref<32xf32, #tpu.memory_space<smem>>
    %321 = vector.broadcast %320 : f32 to vector<8x128xf32>
    %322 = arith.mulf %319, %321 : vector<8x128xf32>
    %323 = arith.addf %309, %322 : vector<8x128xf32>
    %c23 = arith.constant 23 : index
    %324 = memref.load %arg2[%c23] : memref<32xf32, #tpu.memory_space<smem>>
    %325 = vector.broadcast %324 : f32 to vector<8x128xf32>
    %326 = arith.mulf %0, %325 : vector<8x128xf32>
    %cst_94 = arith.constant 0.000000e+00 : f32
    %327 = vector.broadcast %cst_94 : f32 to vector<8x128xf32>
    %328 = arith.subf %327, %326 : vector<8x128xf32>
    %329 = math.exp %328 : vector<8x128xf32>
    %cst_95 = arith.constant 1.000000e+00 : f32
    %330 = vector.broadcast %cst_95 : f32 to vector<8x128xf32>
    %331 = arith.addf %330, %329 : vector<8x128xf32>
    %cst_96 = arith.constant 1.000000e+00 : f32
    %332 = vector.broadcast %cst_96 : f32 to vector<8x128xf32>
    %333 = arith.divf %332, %331 : vector<8x128xf32>
    %c23_97 = arith.constant 23 : index
    %334 = memref.load %arg3[%c23_97] : memref<32xf32, #tpu.memory_space<smem>>
    %335 = vector.broadcast %334 : f32 to vector<8x128xf32>
    %336 = arith.mulf %333, %335 : vector<8x128xf32>
    %337 = arith.addf %323, %336 : vector<8x128xf32>
    %c24 = arith.constant 24 : index
    %338 = memref.load %arg2[%c24] : memref<32xf32, #tpu.memory_space<smem>>
    %339 = vector.broadcast %338 : f32 to vector<8x128xf32>
    %340 = arith.mulf %0, %339 : vector<8x128xf32>
    %cst_98 = arith.constant 0.000000e+00 : f32
    %341 = vector.broadcast %cst_98 : f32 to vector<8x128xf32>
    %342 = arith.subf %341, %340 : vector<8x128xf32>
    %343 = math.exp %342 : vector<8x128xf32>
    %cst_99 = arith.constant 1.000000e+00 : f32
    %344 = vector.broadcast %cst_99 : f32 to vector<8x128xf32>
    %345 = arith.addf %344, %343 : vector<8x128xf32>
    %cst_100 = arith.constant 1.000000e+00 : f32
    %346 = vector.broadcast %cst_100 : f32 to vector<8x128xf32>
    %347 = arith.divf %346, %345 : vector<8x128xf32>
    %c24_101 = arith.constant 24 : index
    %348 = memref.load %arg3[%c24_101] : memref<32xf32, #tpu.memory_space<smem>>
    %349 = vector.broadcast %348 : f32 to vector<8x128xf32>
    %350 = arith.mulf %347, %349 : vector<8x128xf32>
    %351 = arith.addf %337, %350 : vector<8x128xf32>
    %c25 = arith.constant 25 : index
    %352 = memref.load %arg2[%c25] : memref<32xf32, #tpu.memory_space<smem>>
    %353 = vector.broadcast %352 : f32 to vector<8x128xf32>
    %354 = arith.mulf %0, %353 : vector<8x128xf32>
    %cst_102 = arith.constant 0.000000e+00 : f32
    %355 = vector.broadcast %cst_102 : f32 to vector<8x128xf32>
    %356 = arith.subf %355, %354 : vector<8x128xf32>
    %357 = math.exp %356 : vector<8x128xf32>
    %cst_103 = arith.constant 1.000000e+00 : f32
    %358 = vector.broadcast %cst_103 : f32 to vector<8x128xf32>
    %359 = arith.addf %358, %357 : vector<8x128xf32>
    %cst_104 = arith.constant 1.000000e+00 : f32
    %360 = vector.broadcast %cst_104 : f32 to vector<8x128xf32>
    %361 = arith.divf %360, %359 : vector<8x128xf32>
    %c25_105 = arith.constant 25 : index
    %362 = memref.load %arg3[%c25_105] : memref<32xf32, #tpu.memory_space<smem>>
    %363 = vector.broadcast %362 : f32 to vector<8x128xf32>
    %364 = arith.mulf %361, %363 : vector<8x128xf32>
    %365 = arith.addf %351, %364 : vector<8x128xf32>
    %c26 = arith.constant 26 : index
    %366 = memref.load %arg2[%c26] : memref<32xf32, #tpu.memory_space<smem>>
    %367 = vector.broadcast %366 : f32 to vector<8x128xf32>
    %368 = arith.mulf %0, %367 : vector<8x128xf32>
    %cst_106 = arith.constant 0.000000e+00 : f32
    %369 = vector.broadcast %cst_106 : f32 to vector<8x128xf32>
    %370 = arith.subf %369, %368 : vector<8x128xf32>
    %371 = math.exp %370 : vector<8x128xf32>
    %cst_107 = arith.constant 1.000000e+00 : f32
    %372 = vector.broadcast %cst_107 : f32 to vector<8x128xf32>
    %373 = arith.addf %372, %371 : vector<8x128xf32>
    %cst_108 = arith.constant 1.000000e+00 : f32
    %374 = vector.broadcast %cst_108 : f32 to vector<8x128xf32>
    %375 = arith.divf %374, %373 : vector<8x128xf32>
    %c26_109 = arith.constant 26 : index
    %376 = memref.load %arg3[%c26_109] : memref<32xf32, #tpu.memory_space<smem>>
    %377 = vector.broadcast %376 : f32 to vector<8x128xf32>
    %378 = arith.mulf %375, %377 : vector<8x128xf32>
    %379 = arith.addf %365, %378 : vector<8x128xf32>
    %c27 = arith.constant 27 : index
    %380 = memref.load %arg2[%c27] : memref<32xf32, #tpu.memory_space<smem>>
    %381 = vector.broadcast %380 : f32 to vector<8x128xf32>
    %382 = arith.mulf %0, %381 : vector<8x128xf32>
    %cst_110 = arith.constant 0.000000e+00 : f32
    %383 = vector.broadcast %cst_110 : f32 to vector<8x128xf32>
    %384 = arith.subf %383, %382 : vector<8x128xf32>
    %385 = math.exp %384 : vector<8x128xf32>
    %cst_111 = arith.constant 1.000000e+00 : f32
    %386 = vector.broadcast %cst_111 : f32 to vector<8x128xf32>
    %387 = arith.addf %386, %385 : vector<8x128xf32>
    %cst_112 = arith.constant 1.000000e+00 : f32
    %388 = vector.broadcast %cst_112 : f32 to vector<8x128xf32>
    %389 = arith.divf %388, %387 : vector<8x128xf32>
    %c27_113 = arith.constant 27 : index
    %390 = memref.load %arg3[%c27_113] : memref<32xf32, #tpu.memory_space<smem>>
    %391 = vector.broadcast %390 : f32 to vector<8x128xf32>
    %392 = arith.mulf %389, %391 : vector<8x128xf32>
    %393 = arith.addf %379, %392 : vector<8x128xf32>
    %c28 = arith.constant 28 : index
    %394 = memref.load %arg2[%c28] : memref<32xf32, #tpu.memory_space<smem>>
    %395 = vector.broadcast %394 : f32 to vector<8x128xf32>
    %396 = arith.mulf %0, %395 : vector<8x128xf32>
    %cst_114 = arith.constant 0.000000e+00 : f32
    %397 = vector.broadcast %cst_114 : f32 to vector<8x128xf32>
    %398 = arith.subf %397, %396 : vector<8x128xf32>
    %399 = math.exp %398 : vector<8x128xf32>
    %cst_115 = arith.constant 1.000000e+00 : f32
    %400 = vector.broadcast %cst_115 : f32 to vector<8x128xf32>
    %401 = arith.addf %400, %399 : vector<8x128xf32>
    %cst_116 = arith.constant 1.000000e+00 : f32
    %402 = vector.broadcast %cst_116 : f32 to vector<8x128xf32>
    %403 = arith.divf %402, %401 : vector<8x128xf32>
    %c28_117 = arith.constant 28 : index
    %404 = memref.load %arg3[%c28_117] : memref<32xf32, #tpu.memory_space<smem>>
    %405 = vector.broadcast %404 : f32 to vector<8x128xf32>
    %406 = arith.mulf %403, %405 : vector<8x128xf32>
    %407 = arith.addf %393, %406 : vector<8x128xf32>
    %c29 = arith.constant 29 : index
    %408 = memref.load %arg2[%c29] : memref<32xf32, #tpu.memory_space<smem>>
    %409 = vector.broadcast %408 : f32 to vector<8x128xf32>
    %410 = arith.mulf %0, %409 : vector<8x128xf32>
    %cst_118 = arith.constant 0.000000e+00 : f32
    %411 = vector.broadcast %cst_118 : f32 to vector<8x128xf32>
    %412 = arith.subf %411, %410 : vector<8x128xf32>
    %413 = math.exp %412 : vector<8x128xf32>
    %cst_119 = arith.constant 1.000000e+00 : f32
    %414 = vector.broadcast %cst_119 : f32 to vector<8x128xf32>
    %415 = arith.addf %414, %413 : vector<8x128xf32>
    %cst_120 = arith.constant 1.000000e+00 : f32
    %416 = vector.broadcast %cst_120 : f32 to vector<8x128xf32>
    %417 = arith.divf %416, %415 : vector<8x128xf32>
    %c29_121 = arith.constant 29 : index
    %418 = memref.load %arg3[%c29_121] : memref<32xf32, #tpu.memory_space<smem>>
    %419 = vector.broadcast %418 : f32 to vector<8x128xf32>
    %420 = arith.mulf %417, %419 : vector<8x128xf32>
    %421 = arith.addf %407, %420 : vector<8x128xf32>
    %c30 = arith.constant 30 : index
    %422 = memref.load %arg2[%c30] : memref<32xf32, #tpu.memory_space<smem>>
    %423 = vector.broadcast %422 : f32 to vector<8x128xf32>
    %424 = arith.mulf %0, %423 : vector<8x128xf32>
    %cst_122 = arith.constant 0.000000e+00 : f32
    %425 = vector.broadcast %cst_122 : f32 to vector<8x128xf32>
    %426 = arith.subf %425, %424 : vector<8x128xf32>
    %427 = math.exp %426 : vector<8x128xf32>
    %cst_123 = arith.constant 1.000000e+00 : f32
    %428 = vector.broadcast %cst_123 : f32 to vector<8x128xf32>
    %429 = arith.addf %428, %427 : vector<8x128xf32>
    %cst_124 = arith.constant 1.000000e+00 : f32
    %430 = vector.broadcast %cst_124 : f32 to vector<8x128xf32>
    %431 = arith.divf %430, %429 : vector<8x128xf32>
    %c30_125 = arith.constant 30 : index
    %432 = memref.load %arg3[%c30_125] : memref<32xf32, #tpu.memory_space<smem>>
    %433 = vector.broadcast %432 : f32 to vector<8x128xf32>
    %434 = arith.mulf %431, %433 : vector<8x128xf32>
    %435 = arith.addf %421, %434 : vector<8x128xf32>
    %c31 = arith.constant 31 : index
    %436 = memref.load %arg2[%c31] : memref<32xf32, #tpu.memory_space<smem>>
    %437 = vector.broadcast %436 : f32 to vector<8x128xf32>
    %438 = arith.mulf %0, %437 : vector<8x128xf32>
    %cst_126 = arith.constant 0.000000e+00 : f32
    %439 = vector.broadcast %cst_126 : f32 to vector<8x128xf32>
    %440 = arith.subf %439, %438 : vector<8x128xf32>
    %441 = math.exp %440 : vector<8x128xf32>
    %cst_127 = arith.constant 1.000000e+00 : f32
    %442 = vector.broadcast %cst_127 : f32 to vector<8x128xf32>
    %443 = arith.addf %442, %441 : vector<8x128xf32>
    %cst_128 = arith.constant 1.000000e+00 : f32
    %444 = vector.broadcast %cst_128 : f32 to vector<8x128xf32>
    %445 = arith.divf %444, %443 : vector<8x128xf32>
    %c31_129 = arith.constant 31 : index
    %446 = memref.load %arg3[%c31_129] : memref<32xf32, #tpu.memory_space<smem>>
    %447 = vector.broadcast %446 : f32 to vector<8x128xf32>
    %448 = arith.mulf %445, %447 : vector<8x128xf32>
    %449 = arith.addf %435, %448 : vector<8x128xf32>
    %c0_130 = arith.constant 0 : index
    %c0_131 = arith.constant 0 : index
    %450 = vector.load %arg4[%c0_130, %c0_131] : memref<8x128xf32, #tpu.memory_space<vmem>>, vector<8x128xf32>
    tpu.vector_store %arg4[%c0_130, %c0_131], %449 {strides = array<i32>} : memref<8x128xf32, #tpu.memory_space<vmem>>, vector<8x128xf32>,
    return
  }
  func.func @transform_0(%arg0: i32) -> (i32, i32) {
    %c0_i32 = arith.constant 0 : i32
    %c0_i32_0 = arith.constant 0 : i32
    return %arg0, %c0_i32 : i32, i32
  }
  func.func @transform_1(%arg0: i32) -> i32 {
    %c0_i32 = arith.constant 0 : i32
    %c0_i32_0 = arith.constant 0 : i32
    return %c0_i32 : i32
  }
  func.func @transform_2(%arg0: i32) -> i32 {
    %c0_i32 = arith.constant 0 : i32
    %c0_i32_0 = arith.constant 0 : i32
    return %c0_i32 : i32
  }
  func.func @transform_3(%arg0: i32) -> (i32, i32) {
    %c0_i32 = arith.constant 0 : i32
    %c0_i32_0 = arith.constant 0 : i32
    return %arg0, %c0_i32 : i32, i32
  }
}

</mosaic_0001>

<bundles_post_ra>
// kernel: neural_network_forward.1
= control target key start
LH: loop header
LB: loop body
LE: loop exit
PB: predicated region body
PF: predicated region fallthrough
CT: control target
= control target key end

     0   :  { %8 = vsyncpa [#allocation3], 0  ;;  %s2193_s0 = inlined_call_operand.vmem [shape: f32[8,128], index: 0, kind: input, shape index: {}]   ;;  %s2194_s1 = inlined_call_operand.vmem [shape: f32[32], index: 1, kind: input, shape index: {}]   ;;  %s2195_s2 = inlined_call_operand.vmem [shape: f32[32], index: 2, kind: input, shape index: {}]   ;;  %s2196_s3 = inlined_call_operand.vmem [shape: f32[8,128], index: 3, kind: output, shape index: {}]  }
   0x1   :  { %s17_s14 = sshll.u32 %s2194_s1, 4  ;;  %s18_s14 = int_to_ptr.vmem [resolvable:$true] %s17_s14 }
   0x2   :  { %9 = vsyncpa [#allocation5], 0  ;;  %s26_s17 = sshll.u32 %s2195_s2, 4  ;;  %s1100_s18 = smov [#allocation2]   ;;  %s27_s17 = int_to_ptr.vmem [resolvable:$true] %s26_s17 }
   0x3   :  { %20 = dma.vmem_to_smem %s18_s14, 16, %s1100_s18, [#allocation3]  }
   0x4   :  { %s1101_s19 = smov [#allocation4]  }
   0x5   :  { %29 = dma.vmem_to_smem %s27_s17, 16, %s1101_s19, [#allocation5]  }
   0x6   :  { %1096 = dma.done.wait [#allocation3], 16  }
   0x7   :  { %1097 = vsyncadd [#allocation3], 4294967280 }
   0x8   :  { %1098 = dma.done.wait [#allocation5], 16  }
   0x9   :  { %1099 = vsyncadd [#allocation5], 4294967280 }
   0xa   :  { %38 = sfence }
   0xb   :  { %s40_s20 = sld [smem:[#allocation2]]  ;;  %v1131_v0 = vld [vmem:[%s2193_s0] sm:$0xff] }
   0xc   :  { %s879_s21 = sld [smem:[#allocation2 + $0x1]] }
   0xd   :  { %s881_s23 = sld [smem:[#allocation2 + $0x2]] }
   0xe   :  { %s883_s2 = sld [smem:[#allocation2 + $0x3]] }
   0xf   :  { %s885_s24 = sld [smem:[#allocation2 + $0x4]] }
  0x10   :  { %s887_s25 = sld [smem:[#allocation2 + $0x5]] }
  0x11   :  { %v41_v1 = vstv %s40_s20  ;;  %s889_s26 = sld [smem:[#allocation2 + $0x6]] }
  0x12   :  { %v42_v2 = vmul.f32 %v41_v1, %v1131_v0  ;;  %v67_v3 = vstv %s879_s21  ;;  %s891_s27 = sld [smem:[#allocation2 + $0x7]] }
  0x13   :  { %v68_v5 = vmul.f32 %v67_v3, %v1131_v0  ;;  %v93_v6 = vstv %s881_s23  ;;  %s1148_s28 = sld [smem:[#allocation4]] }
  0x14   :  { %v43_v4 = vsub.f32 0.0, %v42_v2  ;;  %v94_v9 = vmul.f32 %v93_v6, %v1131_v0  ;;  %v119_v10 = vstv %s883_s2  ;;  %s1150_s29 = sld [smem:[#allocation4 + $0x1]] }
  0x15   :  { %v69_v8 = vsub.f32 0.0, %v68_v5  ;;  %v120_v13 = vmul.f32 %v119_v10, %v1131_v0  ;;  %v145_v14 = vstv %s885_s24  ;;  %s1155_s30 = sld [smem:[#allocation4 + $0x2]] }
  0x16   :  { %v44_v7 = vmul.f32 1.442695, %v43_v4  ;;  %v95_v12 = vsub.f32 0.0, %v94_v9  ;;  %v146_v17 = vmul.f32 %v145_v14, %v1131_v0  ;;  %v171_v18 = vstv %s887_s25  ;;  %s1159_s4 = sld [smem:[#allocation4 + $0x3]] }
  0x17   :  { %v70_v11 = vmul.f32 1.442695, %v69_v8  ;;  %v121_v16 = vsub.f32 0.0, %v120_v13  ;;  %v172_v21 = vmul.f32 %v171_v18, %v1131_v0  ;;  %v197_v22 = vstv %s889_s26  ;;  %s1161_s5 = sld [smem:[#allocation4 + $0x4]] }
  0x18   :  { %943 = vpow2.f32 %v44_v7  ;;  %v96_v15 = vmul.f32 1.442695, %v95_v12  ;;  %v147_v20 = vsub.f32 0.0, %v146_v17  ;;  %v198_v26 = vmul.f32 %v197_v22, %v1131_v0  ;;  %s1197_s6 = sld [smem:[#allocation2 + $0x8]] }
  0x19   :  { %945 = vpow2.f32 %v70_v11  ;;  %v122_v19 = vmul.f32 1.442695, %v121_v16  ;;  %v173_v25 = vsub.f32 0.0, %v172_v21  ;;  %v223_v39 = vstv %s891_s27  ;;  %s1202_s7 = sld [smem:[#allocation2 + $0x9]] }
  0x1a   :  { %947 = vpow2.f32 %v96_v15  ;;  %v148_v24 = vmul.f32 1.442695, %v147_v20  ;;  %v199_v32 = vsub.f32 0.0, %v198_v26  ;;  %v224_v44 = vmul.f32 %v223_v39, %v1131_v0  ;;  %s1215_s8 = sld [smem:[#allocation2 + $0xa]] }
  0x1b   :  { %949 = vpow2.f32 %v122_v19  ;;  %v174_v31 = vmul.f32 1.442695, %v173_v25  ;;  %v63_v53 = vstv %s1148_s28  ;;  %v89_v54 = vstv %s1150_s29  ;;  %s1235_s9 = sld [smem:[#allocation2 + $0xb]] }
  0x1c   :  { %951 = vpow2.f32 %v148_v24  ;;  %v200_v36 = vmul.f32 1.442695, %v199_v32  ;;  %v225_v51 = vsub.f32 0.0, %v224_v44  ;;  %v115_v58 = vstv %s1155_s30  ;;  %s1276_s10 = sld [smem:[#allocation2 + $0xc]] }
  0x1d   :  { %v141_v59 = vstv %s1159_s4  ;;  %v167_v60 = vstv %s1161_s5  ;;  %s1292_s11 = sld [smem:[#allocation2 + $0xd]] }
  0x1e   :  { %v944_v23 = vpop.eup %943  ;;  %v226_v4 = vmul.f32 1.442695, %v225_v51  ;;  %v249_v32 = vstv %s1197_s6  ;;  %s1331_s12 = sld [smem:[#allocation2 + $0xe]] }
  0x1f   :  { %v1140_v27 = vadd.f32 1.0, %v944_v23  ;;  %v946_v28 = vpop.eup %945  ;;  %s1358_s13 = sld [smem:[#allocation4 + $0x5]] }
  0x20   :  { %v948_v29 = vpop.eup %947  ;;  %v1143_v30 = vadd.f32 1.0, %v946_v28  ;;  %s1378_s14 = sld [smem:[#allocation4 + $0x6]] }
  0x21   :  { %953 = vrcp.f32 %v1140_v27  ;;  %v1145_v33 = vadd.f32 1.0, %v948_v29  ;;  %v950_v34 = vpop.eup %949  ;;  %v56_v48 = vand.u32 2147483647, %v1140_v27  ;;  %v58_v49 = vand.u32 2147483648, %v1140_v27  ;;  %s1387_s15 = sld [smem:[#allocation2 + $0xf]] }
  0x22   :  { %955 = vrcp.f32 %v1143_v30  ;;  %v952_v35 = vpop.eup %951  ;;  %v1157_v38 = vadd.f32 1.0, %v950_v34  ;;  %vm52_vm0 = vweird.f32 %v1140_v27  ;;  %vm78_vm2 = vweird.f32 %v1143_v30  ;;  %s1407_s16 = sld [smem:[#allocation4 + $0x7]] }
  0x23   :  { %957 = vpow2.f32 %v174_v31  ;;  %v1167_v42 = vadd.f32 1.0, %v952_v35  ;;  %vm1191_vm1 = vcmp.eq.f32.partialorder %v56_v48, 8.507059e+37  ;;  %v59_v63 = vor.u32 1.1754944e-38, %v58_v49  ;;  %s1412_s17 = sld [smem:[#allocation4 + $0x8]] }
  0x24   :  { %959 = vrcp.f32 %v1145_v33  ;;  %v82_v1 = vand.u32 2147483647, %v1143_v30  ;;  %v84_v3 = vand.u32 2147483648, %v1143_v30  ;;  %vm104_vm5 = vweird.f32 %v1145_v33  ;;  %s1418_s18 = sld [smem:[#allocation4 + $0x9]] }
  0x25   :  { %961 = vpow2.f32 %v200_v36  ;;  %v108_v9 = vand.u32 2147483647, %v1145_v33  ;;  %v110_v10 = vand.u32 2147483648, %v1145_v33  ;;  %v136_v13 = vand.u32 2147483648, %v1157_v38  ;;  %s1425_s19 = sld [smem:[#allocation4 + $0xa]] }
  0x26   :  { %963 = vrcp.f32 %v1157_v38  ;;  %vm1218_vm6 = vcmp.eq.f32.partialorder %v82_v1, 8.507059e+37  ;;  %v162_v14 = vand.u32 2147483648, %v1167_v42  ;;  %v85_v17 = vor.u32 1.1754944e-38, %v84_v3  ;;  %s1430_s20 = sld [smem:[#allocation4 + $0xb]] }
  0x27   :  { %v1152_v37 = vpop.eup %953  ;;  %965 = vrcp.f32 %v1167_v42  ;;  %v134_v22 = vand.u32 2147483647, %v1157_v38  ;;  %vm1248_vm9 = vcmp.eq.f32.partialorder %v108_v9, 8.507059e+37  ;;  %v111_v24 = vor.u32 1.1754944e-38, %v110_v10  ;;  %s1433_s21 = sld [smem:[#allocation4 + $0xc]] }
  0x28   :  { %v1163_v40 = vpop.eup %955  ;;  %v48_v41 = vmul.f32 %v1152_v37, %v1140_v27  ;;  %vm53_vm3 = vweird.f32 %v1152_v37  ;;  %vm130_vm10 = vweird.f32 %v1157_v38  ;;  %v160_v25 = vand.u32 2147483647, %v1167_v42  ;;  %s1439_s22 = sld [smem:[#allocation2 + $0x10]] }
  0x29   :  { %v74_v43 = vmul.f32 %v1163_v40, %v1143_v30  ;;  %v958_v45 = vpop.eup %957  ;;  %vm79_vm4 = vweird.f32 %v1163_v40  ;;  %vm1228_vm7 = vmor %vm52_vm0, %vm53_vm3  ;;  %v137_v28 = vor.u32 1.1754944e-38, %v136_v13  ;;  %v1260_v29 = vor.u32 1.1754944e-38, %v162_v14  ;;  %s1448_s1 = sld [smem:[#allocation2 + $0x11]] }
  0x2a   :  { %v1173_v46 = vpop.eup %959  ;;  %v49_v47 = vsub.f32 1.0, %v48_v41  ;;  %v1182_v56 = vadd.f32 1.0, %v958_v45  ;;  %vm1241_vm8 = vmor %vm78_vm2, %vm79_vm4  ;;  %vm156_vm12 = vweird.f32 %v1167_v42  ;;  %v275_v34 = vstv %s1202_s7  ;;  %s1504_s23 = sld [smem:[#allocation2 + $0x12]] }
  0x2b   :  { %v75_v50 = vsub.f32 1.0, %v74_v43  ;;  %v962_v52 = vpop.eup %961  ;;  %v100_v55 = vmul.f32 %v1173_v46, %v1145_v33  ;;  %vm105_vm11 = vweird.f32 %v1173_v46  ;;  %vm1270_vm13 = vcmp.eq.f32.partialorder %v134_v22, 8.507059e+37  ;;  %s1510_s2 = sld [smem:[#allocation2 + $0x13]] }
  0x2c   :  { %v1184_v57 = vpop.eup %963  ;;  %v50_v61 = vmul.f32 %v1152_v37, %v49_v47  ;;  %967 = vrcp.f32 %v1182_v56  ;;  %v1209_v8 = vadd.f32 1.0, %v962_v52  ;;  %v186_v39 = vand.u32 2147483647, %v1182_v56  ;;  %vm1284_vm14 = vmor %vm104_vm5, %vm105_vm11  ;;  %s1533_s24 = sld [smem:[#allocation4 + $0xd]] }
  0x2d   :  { %v76_v2 = vmul.f32 %v1163_v40, %v75_v50  ;;  %v1204_v5 = vpop.eup %965  ;;  %v101_v6 = vsub.f32 1.0, %v100_v55  ;;  %v126_v7 = vmul.f32 %v1184_v57, %v1157_v38  ;;  %969 = vpow2.f32 %v226_v4  ;;  %s1564_s25 = sld [smem:[#allocation2 + $0x14]] }
  0x2e   :  { %v51_v11 = vadd.f32 %v1152_v37, %v50_v61  ;;  %v152_v18 = vmul.f32 %v1204_v5, %v1167_v42  ;;  %971 = vrcp.f32 %v1209_v8  ;;  %v250_v41 = vmul.f32 %v249_v32, %v1131_v0  ;;  %s1599_s26 = sld [smem:[#allocation2 + $0x15]] }
  0x2f   :  { %v77_v16 = vadd.f32 %v1163_v40, %v76_v2  ;;  %v102_v20 = vmul.f32 %v1173_v46, %v101_v6  ;;  %v127_v21 = vsub.f32 1.0, %v126_v7  ;;  %v276_v47 = vmul.f32 %v275_v34, %v1131_v0  ;;  %s1649_s27 = sld [smem:[#allocation2 + $0x16]] }
  0x30   :  { %v55_v27 = vsel %vm1228_vm7, %v1152_v37, %v51_v11  ;;  %v153_v31 = vsub.f32 1.0, %v152_v18  ;;  %v301_v48 = vstv %s1215_s8  ;;  %vm131_vm15 = vweird.f32 %v1184_v57  ;;  %s1668_s28 = sld [smem:[#allocation4 + $0xe]] }
  0x31   :  { %v81_v30 = vsel %vm1241_vm8, %v1163_v40, %v77_v16  ;;  %v103_v35 = vadd.f32 %v1173_v46, %v102_v20  ;;  %v128_v36 = vmul.f32 %v1184_v57, %v127_v21  ;;  %v60_v43 = vsel %vm1191_vm1, %v59_v63, %v55_v27  ;;  %vm1313_vm0 = vmor %vm130_vm10, %vm131_vm15  ;;  %s1677_s29 = sld [smem:[#allocation4 + $0xf]] }
  0x32   :  { %v1254_v26 = vpop.eup %967  ;;  %v86_v50 = vsel %vm1218_vm6, %v85_v17, %v81_v30  ;;  %v251_v51 = vsub.f32 0.0, %v250_v41  ;;  %v154_v52 = vmul.f32 %v1204_v5, %v153_v31  ;;  %v277_v55 = vsub.f32 0.0, %v276_v47  ;;  %s1683_s30 = sld [smem:[#allocation4 + $0x10]] }
  0x33   :  { %v970_v40 = vpop.eup %969  ;;  %v178_v45 = vmul.f32 %v1254_v26, %v1182_v56  ;;  %v302_v61 = vmul.f32 %v301_v48, %v1131_v0  ;;  %v327_v62 = vstv %s1235_s9  ;;  %v64_v63 = vmul.f32 %v63_v53, %v60_v43  ;;  %s1703_s4 = sld [smem:[#allocation4 + $0x11]] }
  0x34   :  { %v1294_v49 = vpop.eup %971  ;;  %v1299_v33 = vadd.f32 1.0, %v970_v40  ;;  %v107_v1 = vsel %vm1284_vm14, %v1173_v46, %v103_v35  ;;  %v129_v2 = vadd.f32 %v1184_v57, %v128_v36  ;;  %v188_v3 = vand.u32 2147483648, %v1182_v56  ;;  %s1710_s5 = sld [smem:[#allocation4 + $0x12]] }
  0x35   :  { %vm1317_vm1 = vcmp.eq.f32.partialorder %v160_v25, 8.507059e+37  ;;  %v179_v7 = vsub.f32 1.0, %v178_v45  ;;  %v204_v53 = vmul.f32 %v1294_v49, %v1209_v8  ;;  %v252_v9 = vmul.f32 1.442695, %v251_v51  ;;  %s1716_s6 = sld [smem:[#allocation2 + $0x17]] }
  0x36   :  { %v303_v46 = vsub.f32 0.0, %v302_v61  ;;  %v90_v10 = vmul.f32 %v89_v54, %v86_v50  ;;  %973 = vrcp.f32 %v1299_v33  ;;  %v278_v38 = vmul.f32 1.442695, %v277_v55  ;;  %s1731_s7 = sld [smem:[#allocation4 + $0x13]] }
  0x37   :  { %v328_v11 = vmul.f32 %v327_v62, %v1131_v0  ;;  %v112_v12 = vsel %vm1248_vm9, %v111_v24, %v107_v1  ;;  %v155_v13 = vadd.f32 %v1204_v5, %v154_v52  ;;  %vm157_vm2 = vweird.f32 %v1204_v5  ;;  %s1737_s8 = sld [smem:[#allocation4 + $0x14]] }
  0x38   :  { %975 = vpow2.f32 %v252_v9  ;;  %v133_v54 = vsel %vm1313_vm0, %v1184_v57, %v129_v2  ;;  %v304_v14 = vmul.f32 1.442695, %v303_v46  ;;  %v180_v16 = vmul.f32 %v1254_v26, %v179_v7  ;;  %vm1343_vm3 = vmor %vm156_vm12, %vm157_vm2  ;;  %s1745_s9 = sld [smem:[#allocation2 + $0x18]] }
  0x39   :  { %977 = vpow2.f32 %v278_v38  ;;  %v329_v15 = vsub.f32 0.0, %v328_v11  ;;  %v205_v17 = vsub.f32 1.0, %v204_v53  ;;  %v353_v18 = vstv %s1276_s10  ;;  %s1761_s10 = sld [smem:[#allocation4 + $0x15]] }
  0x3a   :  { %v379_v19 = vstv %s1292_s11  ;;  %v91_v20 = vadd.f32 %v90_v10, %v64_v63  ;;  %v116_v21 = vmul.f32 %v115_v58, %v112_v12  ;;  %vm182_vm4 = vweird.f32 %v1182_v56  ;;  %s1778_s11 = sld [smem:[#allocation2 + $0x19]] }
  0x3b   :  { %v354_v57 = vmul.f32 %v353_v18, %v1131_v0  ;;  %v138_v23 = vsel %vm1270_vm13, %v137_v28, %v133_v54  ;;  %vm183_vm5 = vweird.f32 %v1254_v26  ;;  %vm1352_vm6 = vcmp.eq.f32.partialorder %v186_v39, 8.507059e+37 }
  0x3c   :  { %v330_v58 = vmul.f32 1.442695, %v329_v15  ;;  %v1356_v42 = vpop.eup %973  ;;  %v189_v25 = vor.u32 1.1754944e-38, %v188_v3  ;;  %vm208_vm7 = vweird.f32 %v1209_v8  ;;  %979 = vpow2.f32 %v304_v14  ;;  %vm1373_vm8 = vmor %vm182_vm4, %vm183_vm5 }
  0x3d   :  { %v380_v27 = vmul.f32 %v379_v19, %v1131_v0  ;;  %v159_v30 = vsel %vm1343_vm3, %v1204_v5, %v155_v13  ;;  %v181_v31 = vadd.f32 %v1254_v26, %v180_v16  ;;  %v206_v32 = vmul.f32 %v1294_v49, %v205_v17 }
  0x3e   :  { %v976_v28 = vpop.eup %975  ;;  %v355_v34 = vsub.f32 0.0, %v354_v57  ;;  %v117_v36 = vadd.f32 %v116_v21, %v91_v20  ;;  %v142_v37 = vmul.f32 %v141_v59, %v138_v23  ;;  %vm209_vm9 = vweird.f32 %v1294_v49 }
  0x3f   :  { %v978_v35 = vpop.eup %977  ;;  %v1380_v5 = vadd.f32 1.0, %v976_v28  ;;  %v230_v41 = vmul.f32 %v1356_v42, %v1299_v33  ;;  %981 = vpow2.f32 %v330_v58  ;;  %v405_v59 = vstv %s1331_s12  ;;  %vm1403_vm10 = vmor %vm208_vm7, %vm209_vm9  ;;  %s1785_s12 = sld [smem:[#allocation2 + $0x1a]] }
  0x40   :  { %v1384_v40 = vadd.f32 1.0, %v978_v35  ;;  %v164_v56 = vsel %vm1317_vm1, %v1260_v29, %v159_v30  ;;  %v214_v43 = vand.u32 2147483648, %v1209_v8  ;;  %v381_v44 = vsub.f32 0.0, %v380_v27 }
  0x41   :  { %983 = vrcp.f32 %v1380_v5  ;;  %v185_v45 = vsel %vm1373_vm8, %v1254_v26, %v181_v31  ;;  %v207_v47 = vadd.f32 %v1294_v49, %v206_v32  ;;  %v212_v48 = vand.u32 2147483647, %v1209_v8 }
  0x42   :  { %v356_v50 = vmul.f32 1.442695, %v355_v34  ;;  %v980_v51 = vpop.eup %979  ;;  %v406_v52 = vmul.f32 %v405_v59, %v1131_v0  ;;  %v143_v55 = vadd.f32 %v142_v37, %v117_v36  ;;  %v168_v26 = vmul.f32 %v167_v60, %v164_v56 }
  0x43   :  { %v231_v61 = vsub.f32 1.0, %v230_v41  ;;  %985 = vrcp.f32 %v1384_v40  ;;  %v190_v8 = vsel %vm1352_vm6, %v189_v25, %v185_v45  ;;  %v193_v62 = vstv %s1358_s13  ;;  %s1797_s13 = sld [smem:[#allocation2 + $0x1b]] }
  0x44   :  { %v215_v63 = vor.u32 1.1754944e-38, %v214_v43  ;;  %v382_v1 = vmul.f32 1.442695, %v381_v44  ;;  %v211_v60 = vsel %vm1403_vm10, %v1294_v49, %v207_v47  ;;  %vm213_vm11 = vcmp.eq.f32.partialorder %v212_v48, 8.507059e+37 }
  0x45   :  { %v982_v2 = vpop.eup %981  ;;  %v1423_v3 = vadd.f32 1.0, %v980_v51  ;;  %987 = vpow2.f32 %v356_v50  ;;  %v219_v6 = vstv %s1378_s14  ;;  %v407_v7 = vsub.f32 0.0, %v406_v52 }
  0x46   :  { %v169_v53 = vadd.f32 %v168_v26, %v143_v55  ;;  %v194_v9 = vmul.f32 %v193_v62, %v190_v8  ;;  %v232_v46 = vmul.f32 %v1356_v42, %v231_v61  ;;  %v431_v10 = vstv %s1387_s15 }
  0x47   :  { %v1427_v4 = vpop.eup %983  ;;  %v216_v49 = vsel %vm213_vm11, %v215_v63, %v211_v60  ;;  %vm234_vm12 = vweird.f32 %v1299_v33  ;;  %v1437_v38 = vadd.f32 1.0, %v982_v2  ;;  %989 = vpow2.f32 %v382_v1 }
  0x48   :  { %vm235_vm13 = vweird.f32 %v1356_v42  ;;  %v238_v12 = vand.u32 2147483647, %v1299_v33  ;;  %v256_v13 = vmul.f32 %v1427_v4, %v1380_v5  ;;  %991 = vrcp.f32 %v1423_v3 }
  0x49   :  { %v1441_v11 = vpop.eup %985  ;;  %v240_v54 = vand.u32 2147483648, %v1299_v33  ;;  %v408_v14 = vmul.f32 1.442695, %v407_v7  ;;  %v432_v15 = vmul.f32 %v431_v10, %v1131_v0  ;;  %v195_v17 = vadd.f32 %v194_v9, %v169_v53  ;;  %vm1455_vm14 = vmor %vm234_vm12, %vm235_vm13 }
  0x4a   :  { %v220_v18 = vmul.f32 %v219_v6, %v216_v49  ;;  %v233_v19 = vadd.f32 %v1356_v42, %v232_v46  ;;  %v245_v21 = vstv %s1407_s16  ;;  %v271_v22 = vstv %s1412_s17  ;;  %s1856_s16 = sld [smem:[#allocation2 + $0x1d]] }
  0x4b   :  { %v988_v16 = vpop.eup %987  ;;  %v282_v57 = vmul.f32 %v1441_v11, %v1384_v40  ;;  %993 = vrcp.f32 %v1437_v38  ;;  %vm1464_vm15 = vcmp.eq.f32.partialorder %v238_v12, 8.507059e+37  ;;  %v257_v24 = vsub.f32 1.0, %v256_v13  ;;  %s1860_s17 = sld [smem:[#allocation4 + $0x16]] }
  0x4c   :  { %v297_v33 = vstv %s1418_s18  ;;  %v323_v58 = vstv %s1425_s19  ;;  %v241_v27 = vor.u32 1.1754944e-38, %v240_v54  ;;  %v1470_v28 = vadd.f32 1.0, %v988_v16  ;;  %s1909_s18 = sld [smem:[#allocation4 + $0x17]] }
  0x4d   :  { %v990_v25 = vpop.eup %989  ;;  %995 = vpow2.f32 %v408_v14  ;;  %v433_v30 = vsub.f32 0.0, %v432_v15  ;;  %v221_v32 = vadd.f32 %v220_v18, %v195_v17  ;;  %v237_v34 = vsel %vm1455_vm14, %v1356_v42, %v233_v19  ;;  %s1921_s19 = sld [smem:[#allocation2 + $0x1e]] }
  0x4e   :  { %v1472_v31 = vpop.eup %991  ;;  %v349_v35 = vstv %s1430_s20  ;;  %v375_v36 = vstv %s1433_s21  ;;  %v264_v37 = vand.u32 2147483647, %v1380_v5  ;;  %v266_v39 = vand.u32 2147483648, %v1380_v5  ;;  %s1941_s20 = sld [smem:[#allocation4 + $0x18]] }
  0x4f   :  { %v283_v41 = vsub.f32 1.0, %v282_v57  ;;  %v457_v59 = vstv %s1439_s22  ;;  %v258_v56 = vmul.f32 %v1427_v4, %v257_v24  ;;  %v290_v43 = vand.u32 2147483647, %v1384_v40  ;;  %s1966_s21 = sld [smem:[#allocation4 + $0x19]] }
  0x50   :  { %v1484_v44 = vadd.f32 1.0, %v990_v25  ;;  %v483_v45 = vstv %s1448_s1  ;;  %v242_v42 = vsel %vm1464_vm15, %v241_v27, %v237_v34  ;;  %v308_v48 = vmul.f32 %v1472_v31, %v1423_v3  ;;  %s2042_s22 = sld [smem:[#allocation2 + $0x1f]] }
  0x51   :  { %v1487_v47 = vpop.eup %993  ;;  %997 = vrcp.f32 %v1470_v28  ;;  %v434_v50 = vmul.f32 1.442695, %v433_v30  ;;  %vm260_vm0 = vweird.f32 %v1380_v5  ;;  %vm261_vm1 = vweird.f32 %v1427_v4  ;;  %s2091_s1 = sld [smem:[#allocation4 + $0x1a]] }
  0x52   :  { %v292_v51 = vand.u32 2147483648, %v1384_v40  ;;  %v458_v29 = vmul.f32 %v457_v59, %v1131_v0  ;;  %vm1498_vm2 = vcmp.eq.f32.partialorder %v264_v37, 8.507059e+37  ;;  %v267_v26 = vor.u32 1.1754944e-38, %v266_v39  ;;  %vm1514_vm4 = vmor %vm260_vm0, %vm261_vm1 }
  0x53   :  { %v996_v52 = vpop.eup %995  ;;  %v284_v61 = vmul.f32 %v1441_v11, %v283_v41  ;;  %vm286_vm3 = vweird.f32 %v1384_v40  ;;  %v246_v8 = vmul.f32 %v245_v21, %v242_v42  ;;  %v259_v62 = vadd.f32 %v1427_v4, %v258_v56 }
  0x54   :  { %v334_v63 = vmul.f32 %v1487_v47, %v1437_v38  ;;  %999 = vrcp.f32 %v1484_v44  ;;  %vm287_vm5 = vweird.f32 %v1441_v11  ;;  %vm1519_vm6 = vcmp.eq.f32.partialorder %v290_v43, 8.507059e+37 }
  0x55   :  { %v309_v60 = vsub.f32 1.0, %v308_v48  ;;  %v316_v6 = vand.u32 2147483647, %v1423_v3  ;;  %1001 = vpow2.f32 %v434_v50  ;;  %v293_v7 = vor.u32 1.1754944e-38, %v292_v51  ;;  %vm1542_vm9 = vmor %vm286_vm3, %vm287_vm5 }
  0x56   :  { %v318_v53 = vand.u32 2147483648, %v1423_v3  ;;  %v1525_v9 = vadd.f32 1.0, %v996_v52  ;;  %v459_v5 = vsub.f32 0.0, %v458_v29  ;;  %v285_v10 = vadd.f32 %v1441_v11, %v284_v61 }
  0x57   :  { %v1527_v46 = vpop.eup %997  ;;  %vm312_vm7 = vweird.f32 %v1423_v3  ;;  %vm338_vm8 = vweird.f32 %v1437_v38  ;;  %v342_v49 = vand.u32 2147483647, %v1437_v38  ;;  %v247_v12 = vadd.f32 %v246_v8, %v221_v32 }
  0x58   :  { %v263_v13 = vsel %vm1514_vm4, %v1427_v4, %v259_v62  ;;  %v335_v14 = vsub.f32 1.0, %v334_v63  ;;  %v344_v15 = vand.u32 2147483648, %v1437_v38  ;;  %v310_v16 = vmul.f32 %v1472_v31, %v309_v60 }
  0x59   :  { %vm1548_vm10 = vcmp.eq.f32.partialorder %v316_v6, 8.507059e+37  ;;  %v460_v18 = vmul.f32 1.442695, %v459_v5  ;;  %v484_v4 = vmul.f32 %v483_v45, %v1131_v0  ;;  %vm313_vm11 = vweird.f32 %v1472_v31 }
  0x5a   :  { %v1553_v19 = vpop.eup %999  ;;  %v319_v40 = vor.u32 1.1754944e-38, %v318_v53  ;;  %v360_v20 = vmul.f32 %v1527_v46, %v1470_v28  ;;  %1003 = vrcp.f32 %v1525_v9  ;;  %v268_v57 = vsel %vm1498_vm2, %v267_v26, %v263_v13  ;;  %vm1583_vm13 = vmor %vm312_vm7, %vm313_vm11 }
  0x5b   :  { %v1002_v21 = vpop.eup %1001  ;;  %v289_v23 = vsel %vm1542_vm9, %v1441_v11, %v285_v10  ;;  %1005 = vpow2.f32 %v460_v18  ;;  %v485_v24 = vsub.f32 0.0, %v484_v4  ;;  %v336_v25 = vmul.f32 %v1487_v47, %v335_v14 }
  0x5c   :  { %v1567_v27 = vadd.f32 1.0, %v1002_v21  ;;  %v509_v30 = vstv %s1504_s23  ;;  %v535_v32 = vstv %s1510_s2  ;;  %v311_v34 = vadd.f32 %v1472_v31, %v310_v16  ;;  %s2123_s23 = sld [smem:[#allocation4 + $0x1b]] }
  0x5d   :  { %vm1572_vm12 = vcmp.eq.f32.partialorder %v342_v49, 8.507059e+37  ;;  %v386_v11 = vmul.f32 %v1553_v19, %v1484_v44  ;;  %v486_v39 = vmul.f32 1.442695, %v485_v24  ;;  %v510_v41 = vmul.f32 %v509_v30, %v1131_v0  ;;  %s2146_s2 = sld [smem:[#allocation4 + $0x1c]] }
  0x5e   :  { %v345_v56 = vor.u32 1.1754944e-38, %v344_v15  ;;  %v361_v43 = vsub.f32 1.0, %v360_v20  ;;  %1007 = vrcp.f32 %v1567_v27  ;;  %v536_v45 = vmul.f32 %v535_v32, %v1131_v0 }
  0x5f   :  { %v272_v42 = vmul.f32 %v271_v22, %v268_v57  ;;  %vm339_vm14 = vweird.f32 %v1487_v47  ;;  %vm364_vm15 = vweird.f32 %v1470_v28  ;;  %v401_v48 = vstv %s1533_s24  ;;  %s2171_s24 = sld [smem:[#allocation4 + $0x1d]] }
  0x60   :  { %v1594_v50 = vpop.eup %1003  ;;  %v294_v3 = vsel %vm1519_vm6, %v293_v7, %v289_v23  ;;  %v368_v51 = vand.u32 2147483647, %v1470_v28  ;;  %1009 = vpow2.f32 %v486_v39  ;;  %v511_v29 = vsub.f32 0.0, %v510_v41  ;;  %vm1608_vm0 = vmor %vm338_vm8, %vm339_vm14 }
  0x61   :  { %v1006_v52 = vpop.eup %1005  ;;  %v315_v22 = vsel %vm1583_vm13, %v1472_v31, %v311_v34  ;;  %v337_v55 = vadd.f32 %v1487_v47, %v336_v25  ;;  %v370_v26 = vand.u32 2147483648, %v1470_v28  ;;  %v387_v61 = vsub.f32 1.0, %v386_v11 }
  0x62   :  { %v362_v62 = vmul.f32 %v1527_v46, %v361_v43  ;;  %v1613_v63 = vadd.f32 1.0, %v1006_v52  ;;  %v512_v1 = vmul.f32 1.442695, %v511_v29  ;;  %v537_v2 = vsub.f32 0.0, %v536_v45 }
  0x63   :  { %v273_v60 = vadd.f32 %v272_v42, %v247_v12  ;;  %v298_v31 = vmul.f32 %v297_v33, %v294_v3  ;;  %v412_v6 = vmul.f32 %v1594_v50, %v1525_v9  ;;  %v561_v7 = vstv %s1564_s25  ;;  %s938_s25 = sld [smem:[#allocation4 + $0x1e]] }
  0x64   :  { %v1620_v53 = vpop.eup %1007  ;;  %v320_v38 = vsel %vm1548_vm10, %v319_v40, %v315_v22  ;;  %vm365_vm1 = vweird.f32 %v1527_v46  ;;  %vm390_vm2 = vweird.f32 %v1484_v44  ;;  %1011 = vrcp.f32 %v1613_v63 }
  0x65   :  { %v341_v33 = vsel %vm1608_vm0, %v1487_v47, %v337_v55  ;;  %v388_v5 = vmul.f32 %v1553_v19, %v387_v61  ;;  %v394_v10 = vand.u32 2147483647, %v1484_v44  ;;  %1013 = vpow2.f32 %v512_v1  ;;  %vm1640_vm3 = vmor %vm364_vm15, %vm365_vm1 }
  0x66   :  { %v1010_v49 = vpop.eup %1009  ;;  %v363_v12 = vadd.f32 %v1527_v46, %v362_v62  ;;  %v438_v13 = vmul.f32 %v1620_v53, %v1567_v27  ;;  %v538_v54 = vmul.f32 1.442695, %v537_v2  ;;  %v562_v14 = vmul.f32 %v561_v7, %v1131_v0 }
  0x67   :  { %v299_v15 = vadd.f32 %v298_v31, %v273_v60  ;;  %v324_v16 = vmul.f32 %v323_v58, %v320_v38  ;;  %vm391_vm4 = vweird.f32 %v1553_v19  ;;  %v413_v17 = vsub.f32 1.0, %v412_v6 }
  0x68   :  { %v346_v18 = vsel %vm1572_vm12, %v345_v56, %v341_v33  ;;  %v396_v4 = vand.u32 2147483648, %v1484_v44  ;;  %v563_v40 = vsub.f32 0.0, %v562_v14  ;;  %v587_v20 = vstv %s1599_s26  ;;  %vm1661_vm6 = vmor %vm390_vm2, %vm391_vm4  ;;  %s940_s26 = sld [smem:[#allocation4 + $0x1f]] }
  0x69   :  { %v371_v58 = vor.u32 1.1754944e-38, %v370_v26  ;;  %v389_v28 = vadd.f32 %v1553_v19, %v388_v5  ;;  %v1652_v21 = vadd.f32 1.0, %v1010_v49  ;;  %1015 = vpow2.f32 %v538_v54 }
  0x6a   :  { %v1654_v57 = vpop.eup %1011  ;;  %v367_v23 = vsel %vm1640_vm3, %v1527_v46, %v363_v12  ;;  %vm369_vm5 = vcmp.eq.f32.partialorder %v368_v51, 8.507059e+37  ;;  %v439_v25 = vsub.f32 1.0, %v438_v13  ;;  %v564_v30 = vmul.f32 1.442695, %v563_v40 }
  0x6b   :  { %v1014_v32 = vpop.eup %1013  ;;  %v325_v34 = vadd.f32 %v324_v16, %v299_v15  ;;  %v350_v37 = vmul.f32 %v349_v35, %v346_v18  ;;  %v414_v11 = vmul.f32 %v1594_v50, %v413_v17  ;;  %v588_v39 = vmul.f32 %v587_v20, %v1131_v0 }
  0x6c   :  { %vm1671_vm7 = vcmp.eq.f32.partialorder %v394_v10, 8.507059e+37  ;;  %v397_v44 = vor.u32 1.1754944e-38, %v396_v4  ;;  %vm416_vm8 = vweird.f32 %v1525_v9  ;;  %v422_v41 = vand.u32 2147483648, %v1525_v9 }
  0x6d   :  { %v372_v59 = vsel %vm369_vm5, %v371_v58, %v367_v23  ;;  %v393_v35 = vsel %vm1661_vm6, %v1553_v19, %v389_v28  ;;  %vm417_vm9 = vweird.f32 %v1594_v50  ;;  %1017 = vrcp.f32 %v1652_v21 }
  0x6e   :  { %v440_v56 = vmul.f32 %v1620_v53, %v439_v25  ;;  %v464_v43 = vmul.f32 %v1654_v57, %v1613_v63  ;;  %v1689_v45 = vadd.f32 1.0, %v1014_v32  ;;  %1019 = vpow2.f32 %v564_v30  ;;  %vm1697_vm10 = vmor %vm416_vm8, %vm417_vm9 }
  0x6f   :  { %v1016_v42 = vpop.eup %1015  ;;  %v351_v3 = vadd.f32 %v350_v37, %v325_v34  ;;  %v415_v51 = vadd.f32 %v1594_v50, %v414_v11  ;;  %v420_v19 = vand.u32 2147483647, %v1525_v9  ;;  %v589_v29 = vsub.f32 0.0, %v588_v39 }
  0x70   :  { %v376_v52 = vmul.f32 %v375_v36, %v372_v59  ;;  %vm442_vm11 = vweird.f32 %v1567_v27  ;;  %vm443_vm12 = vweird.f32 %v1620_v53  ;;  %v613_v55 = vstv %s1649_s27 }
  0x71   :  { %v398_v26 = vsel %vm1671_vm7, %v397_v44, %v393_v35  ;;  %v423_v61 = vor.u32 1.1754944e-38, %v422_v41  ;;  %v446_v8 = vand.u32 2147483647, %v1567_v27  ;;  %v448_v36 = vand.u32 2147483648, %v1567_v27  ;;  %vm1727_vm14 = vmor %vm442_vm11, %vm443_vm12 }
  0x72   :  { %v441_v9 = vadd.f32 %v1620_v53, %v440_v56  ;;  %v465_v62 = vsub.f32 1.0, %v464_v43  ;;  %1021 = vrcp.f32 %v1689_v45  ;;  %v1714_v1 = vadd.f32 1.0, %v1016_v42 }
  0x73   :  { %v1718_v2 = vpop.eup %1017  ;;  %v419_v60 = vsel %vm1697_vm10, %v1594_v50, %v415_v51  ;;  %vm421_vm13 = vcmp.eq.f32.partialorder %v420_v19, 8.507059e+37  ;;  %v590_v6 = vmul.f32 1.442695, %v589_v29  ;;  %v614_v7 = vmul.f32 %v613_v55, %v1131_v0 }
  0x74   :  { %v1020_v38 = vpop.eup %1019  ;;  %v377_v33 = vadd.f32 %v376_v52, %v351_v3  ;;  %v402_v5 = vmul.f32 %v401_v48, %v398_v26  ;;  %v427_v10 = vstv %s1668_s28  ;;  %vm1739_vm15 = vcmp.eq.f32.partialorder %v446_v8, 8.507059e+37 }
  0x75   :  { %v449_v27 = vor.u32 1.1754944e-38, %v448_v36  ;;  %v453_v49 = vstv %s1677_s29  ;;  %v479_v12 = vstv %s1683_s30  ;;  %v424_v13 = vsel %vm421_vm13, %v423_v61, %v419_v60 }
  0x76   :  { %v445_v54 = vsel %vm1727_vm14, %v1620_v53, %v441_v9  ;;  %v466_v48 = vmul.f32 %v1654_v57, %v465_v62  ;;  %1023 = vrcp.f32 %v1714_v1  ;;  %v490_v14 = vmul.f32 %v1718_v2, %v1652_v21 }
  0x77   :  { %v1754_v15 = vadd.f32 1.0, %v1020_v38  ;;  %1025 = vpow2.f32 %v590_v6  ;;  %v615_v16 = vsub.f32 0.0, %v614_v7  ;;  %v403_v17 = vadd.f32 %v402_v5, %v377_v33 }
  0x78   :  { %v1756_v47 = vpop.eup %1021  ;;  %vm468_vm0 = vweird.f32 %v1613_v63  ;;  %vm469_vm1 = vweird.f32 %v1654_v57  ;;  %v505_v53 = vstv %s1703_s4  ;;  %v428_v18 = vmul.f32 %v427_v10, %v424_v13 }
  0x79   :  { %v472_v4 = vand.u32 2147483647, %v1613_v63  ;;  %v474_v40 = vand.u32 2147483648, %v1613_v63  ;;  %v616_v20 = vmul.f32 1.442695, %v615_v16  ;;  %v450_v58 = vsel %vm1739_vm15, %v449_v27, %v445_v54  ;;  %vm1770_vm2 = vmor %vm468_vm0, %vm469_vm1 }
  0x7a   :  { %v467_v28 = vadd.f32 %v1654_v57, %v466_v48  ;;  %v498_v23 = vand.u32 2147483647, %v1652_v21  ;;  %v639_v24 = vstv %s1716_s6  ;;  %v491_v30 = vsub.f32 1.0, %v490_v14 }
  0x7b   :  { %v516_v32 = vmul.f32 %v1756_v47, %v1689_v45  ;;  %1027 = vrcp.f32 %v1754_v15  ;;  %v640_v63 = vmul.f32 %v639_v24, %v1131_v0  ;;  %v500_v37 = vand.u32 2147483648, %v1652_v21 }
  0x7c   :  { %v1780_v34 = vpop.eup %1023  ;;  %v531_v11 = vstv %s1710_s5  ;;  %v557_v39 = vstv %s1731_s7  ;;  %1029 = vpow2.f32 %v616_v20  ;;  %vm1787_vm3 = vcmp.eq.f32.partialorder %v472_v4, 8.507059e+37 }
  0x7d   :  { %v1026_v46 = vpop.eup %1025  ;;  %v475_v41 = vor.u32 1.1754944e-38, %v474_v40  ;;  %v583_v59 = vstv %s1737_s8  ;;  %v665_v0 = vstv %s1745_s9  ;;  %v429_v35 = vadd.f32 %v428_v18, %v403_v17 }
  0x7e   :  { %v454_v56 = vmul.f32 %v453_v49, %v450_v58  ;;  %v471_v43 = vsel %vm1770_vm2, %v1654_v57, %v467_v28  ;;  %vm494_vm4 = vweird.f32 %v1652_v21  ;;  %v492_v42 = vmul.f32 %v1718_v2, %v491_v30  ;;  %v1812_v57 = vld [vmem:[%s2193_s0] sm:$0xff]  ;;  %s1825_s0 = sld [smem:[#allocation2 + $0x1c]] }
  0x7f   :  { %vm1800_vm5 = vcmp.eq.f32.partialorder %v498_v23, 8.507059e+37  ;;  %v517_v51 = vsub.f32 1.0, %v516_v32  ;;  %v542_v19 = vmul.f32 %v1780_v34, %v1714_v1  ;;  %v641_v29 = vsub.f32 0.0, %v640_v63 }
  0x80   :  { %v501_v52 = vor.u32 1.1754944e-38, %v500_v37  ;;  %v1806_v22 = vadd.f32 1.0, %v1026_v46  ;;  %v609_v55 = vstv %s1761_s10  ;;  %v666_v26 = vmul.f32 %v1812_v57, %v665_v0 }
  0x81   :  { %v1815_v61 = vpop.eup %1027  ;;  %vm495_vm6 = vweird.f32 %v1718_v2  ;;  %v524_v8 = vand.u32 2147483647, %v1689_v45  ;;  %v526_v36 = vand.u32 2147483648, %v1689_v45  ;;  %v642_v9 = vmul.f32 1.442695, %v641_v29 }
  0x82   :  { %v1030_v62 = vpop.eup %1029  ;;  %v455_v60 = vadd.f32 %v454_v56, %v429_v35  ;;  %v476_v31 = vsel %vm1787_vm3, %v475_v41, %v471_v43  ;;  %vm520_vm7 = vweird.f32 %v1689_v45  ;;  %v667_v6 = vsub.f32 0.0, %v666_v26  ;;  %vm1829_vm8 = vmor %vm494_vm4, %vm495_vm6 }
  0x83   :  { %v493_v7 = vadd.f32 %v1718_v2, %v492_v42  ;;  %v518_v38 = vmul.f32 %v1756_v47, %v517_v51  ;;  %v543_v33 = vsub.f32 1.0, %v542_v19  ;;  %1031 = vpow2.f32 %v642_v9 }
  0x84   :  { %v568_v10 = vmul.f32 %v1815_v61, %v1754_v15  ;;  %1033 = vrcp.f32 %v1806_v22  ;;  %v691_v50 = vstv %s1778_s11  ;;  %v717_v27 = vstv %s1785_s12 }
  0x85   :  { %vm1838_vm9 = vcmp.eq.f32.partialorder %v524_v8, 8.507059e+37  ;;  %v527_v13 = vor.u32 1.1754944e-38, %v526_v36  ;;  %vm546_vm10 = vweird.f32 %v1714_v1  ;;  %v550_v21 = vand.u32 2147483647, %v1714_v1 }
  0x86   :  { %v1844_v54 = vadd.f32 1.0, %v1030_v62  ;;  %vm521_vm11 = vweird.f32 %v1756_v47  ;;  %v552_v48 = vand.u32 2147483648, %v1714_v1  ;;  %v668_v14 = vmul.f32 1.442695, %v667_v6 }
  0x87   :  { %v743_v16 = vstv %s1797_s13  ;;  %v480_v17 = vmul.f32 %v479_v12, %v476_v31  ;;  %v497_v18 = vsel %vm1829_vm8, %v1718_v2, %v493_v7  ;;  %v692_v4 = vmul.f32 %v1812_v57, %v691_v50  ;;  %vm1866_vm12 = vmor %vm520_vm7, %vm521_vm11 }
  0x88   :  { %v718_v40 = vmul.f32 %v1812_v57, %v717_v27  ;;  %v519_v20 = vadd.f32 %v1756_v47, %v518_v38  ;;  %v544_v58 = vmul.f32 %v1780_v34, %v543_v33  ;;  %v569_v28 = vsub.f32 1.0, %v568_v10 }
  0x89   :  { %1035 = vpow2.f32 %v668_v14  ;;  %v1032_v12 = vpop.eup %1031  ;;  %v693_v23 = vsub.f32 0.0, %v692_v4  ;;  %v744_v25 = vmul.f32 %v1812_v57, %v743_v16  ;;  %v502_v32 = vsel %vm1800_vm5, %v501_v52, %v497_v18 }
  0x8a   :  { %1037 = vrcp.f32 %v1844_v54  ;;  %v719_v24 = vsub.f32 0.0, %v718_v40  ;;  %v1872_v30 = vpop.eup %1033  ;;  %vm547_vm13 = vweird.f32 %v1780_v34  ;;  %vm1877_vm14 = vcmp.eq.f32.partialorder %v550_v21, 8.507059e+37 }
  0x8b   :  { %vm572_vm15 = vweird.f32 %v1754_v15  ;;  %v1882_v45 = vadd.f32 1.0, %v1032_v12  ;;  %v694_v37 = vmul.f32 1.442695, %v693_v23  ;;  %v745_v44 = vsub.f32 0.0, %v744_v25  ;;  %vm1901_vm0 = vmor %vm546_vm10, %vm547_vm13 }
  0x8c   :  { %v720_v46 = vmul.f32 1.442695, %v719_v24  ;;  %v769_v41 = vstv %s1825_s0  ;;  %v481_v0 = vadd.f32 %v480_v17, %v455_v60  ;;  %v523_v35 = vsel %vm1866_vm12, %v1756_v47, %v519_v20 }
  0x8d   :  { %v576_v56 = vand.u32 2147483647, %v1754_v15  ;;  %v578_v43 = vand.u32 2147483648, %v1754_v15  ;;  %v545_v42 = vadd.f32 %v1780_v34, %v544_v58  ;;  %v570_v3 = vmul.f32 %v1815_v61, %v569_v28 }
  0x8e   :  { %v594_v51 = vmul.f32 %v1872_v30, %v1806_v22  ;;  %1039 = vrcp.f32 %v1882_v45  ;;  %v506_v29 = vmul.f32 %v505_v53, %v502_v32  ;;  %v746_v52 = vmul.f32 1.442695, %v745_v44 }
  0x8f   :  { %v1036_v19 = vpop.eup %1035  ;;  %1041 = vpow2.f32 %v694_v37  ;;  %v770_v26 = vmul.f32 %v1812_v57, %v769_v41  ;;  %vm573_vm1 = vweird.f32 %v1815_v61  ;;  %v795_v53 = vstv %s1856_s16 }
  0x90   :  { %v1906_v8 = vpop.eup %1037  ;;  %v1911_v36 = vadd.f32 1.0, %v1036_v19  ;;  %1043 = vpow2.f32 %v720_v46  ;;  %v528_v1 = vsel %vm1838_vm9, %v527_v13, %v523_v35  ;;  %v553_v9 = vor.u32 1.1754944e-38, %v552_v48  ;;  %vm1930_vm3 = vmor %vm572_vm15, %vm573_vm1 }
  0x91   :  { %vm1916_vm2 = vcmp.eq.f32.partialorder %v576_v56, 8.507059e+37  ;;  %v635_v60 = vstv %s1860_s17  ;;  %v549_v31 = vsel %vm1901_vm0, %v1780_v34, %v545_v42  ;;  %v571_v6 = vadd.f32 %v1815_v61, %v570_v3 }
  0x92   :  { %v595_v7 = vsub.f32 1.0, %v594_v51  ;;  %1045 = vrcp.f32 %v1911_v36  ;;  %v620_v33 = vmul.f32 %v1906_v8, %v1844_v54  ;;  %v771_v5 = vsub.f32 0.0, %v770_v26 }
  0x93   :  { %1047 = vpow2.f32 %v746_v52  ;;  %v796_v10 = vmul.f32 %v1812_v57, %v795_v53  ;;  %v507_v50 = vadd.f32 %v506_v29, %v481_v0  ;;  %v579_v27 = vor.u32 1.1754944e-38, %v578_v43 }
  0x94   :  { %v1937_v34 = vpop.eup %1039  ;;  %vm598_vm4 = vweird.f32 %v1806_v22  ;;  %v602_v49 = vand.u32 2147483647, %v1806_v22  ;;  %v532_v13 = vmul.f32 %v531_v11, %v528_v1  ;;  %v604_v21 = vand.u32 2147483648, %v1806_v22 }
  0x95   :  { %v1042_v15 = vpop.eup %1041  ;;  %v772_v48 = vmul.f32 1.442695, %v771_v5  ;;  %v797_v14 = vsub.f32 0.0, %v796_v10  ;;  %v554_v17 = vsel %vm1877_vm14, %v553_v9, %v549_v31  ;;  %v575_v18 = vsel %vm1930_vm3, %v1815_v61, %v571_v6 }
  0x96   :  { %v1044_v16 = vpop.eup %1043  ;;  %v596_v4 = vmul.f32 %v1872_v30, %v595_v7  ;;  %v1952_v40 = vadd.f32 1.0, %v1042_v15  ;;  %v621_v11 = vsub.f32 1.0, %v620_v33  ;;  %v646_v20 = vmul.f32 %v1937_v34, %v1882_v45 }
  0x97   :  { %v1956_v58 = vadd.f32 1.0, %v1044_v16  ;;  %1049 = vpow2.f32 %v772_v48  ;;  %vm599_vm5 = vweird.f32 %v1872_v30  ;;  %vm1961_vm6 = vcmp.eq.f32.partialorder %v602_v49, 8.507059e+37 }
  0x98   :  { %v1958_v28 = vpop.eup %1045  ;;  %1051 = vrcp.f32 %v1952_v40  ;;  %v798_v61 = vmul.f32 1.442695, %v797_v14  ;;  %v533_v23 = vadd.f32 %v532_v13, %v507_v50  ;;  %v558_v24 = vmul.f32 %v557_v39, %v554_v17  ;;  %vm1979_vm7 = vmor %vm598_vm4, %vm599_vm5 }
  0x99   :  { %v1048_v2 = vpop.eup %1047  ;;  %v661_v25 = vstv %s1909_s18  ;;  %v821_v32 = vstv %s1921_s19  ;;  %v580_v63 = vsel %vm1916_vm2, %v579_v27, %v575_v18  ;;  %v597_v37 = vadd.f32 %v1872_v30, %v596_v4 }
  0x9a   :  { %v628_v46 = vand.u32 2147483647, %v1844_v54  ;;  %1053 = vrcp.f32 %v1956_v58  ;;  %v605_v41 = vor.u32 1.1754944e-38, %v604_v21  ;;  %v622_v39 = vmul.f32 %v1906_v8, %v621_v11 }
  0x9b   :  { %v647_v0 = vsub.f32 1.0, %v646_v20  ;;  %v672_v35 = vmul.f32 %v1958_v28, %v1911_v36  ;;  %v687_v56 = vstv %s1941_s20  ;;  %v1987_v43 = vadd.f32 1.0, %v1048_v2 }
  0x9c   :  { %1055 = vpow2.f32 %v798_v61  ;;  %v822_v42 = vmul.f32 %v1812_v57, %v821_v32  ;;  %v559_v51 = vadd.f32 %v558_v24, %v533_v23  ;;  %v584_v22 = vmul.f32 %v583_v59, %v580_v63 }
  0x9d   :  { %v1050_v3 = vpop.eup %1049  ;;  %vm624_vm8 = vweird.f32 %v1844_v54  ;;  %vm625_vm9 = vweird.f32 %v1906_v8  ;;  %v601_v29 = vsel %vm1979_vm7, %v1872_v30, %v597_v37  ;;  %vm1999_vm10 = vcmp.eq.f32.partialorder %v628_v46, 8.507059e+37 }
  0x9e   :  { %v1994_v19 = vpop.eup %1051  ;;  %v630_v52 = vand.u32 2147483648, %v1844_v54  ;;  %1057 = vrcp.f32 %v1987_v43  ;;  %v623_v59 = vadd.f32 %v1906_v8, %v622_v39  ;;  %v648_v26 = vmul.f32 %v1937_v34, %v647_v0  ;;  %vm2011_vm11 = vmor %vm624_vm8, %vm625_vm9 }
  0x9f   :  { %v673_v53 = vsub.f32 1.0, %v672_v35  ;;  %v698_v1 = vmul.f32 %v1994_v19, %v1952_v40  ;;  %v656_v62 = vand.u32 2147483648, %v1882_v45  ;;  %v713_v31 = vstv %s1966_s21 }
  0xa0   :  { %v2009_v9 = vpop.eup %1053  ;;  %v2017_v54 = vadd.f32 1.0, %v1050_v3  ;;  %v823_v6 = vsub.f32 0.0, %v822_v42  ;;  %v585_v7 = vadd.f32 %v584_v22, %v559_v51  ;;  %v606_v38 = vsel %vm1961_vm6, %v605_v41, %v601_v29 }
  0xa1   :  { %vm650_vm12 = vweird.f32 %v1882_v45  ;;  %vm651_vm13 = vweird.f32 %v1937_v34  ;;  %v631_v5 = vor.u32 1.1754944e-38, %v630_v52  ;;  %v699_v10 = vsub.f32 1.0, %v698_v1 }
  0xa2   :  { %v1056_v33 = vpop.eup %1055  ;;  %v724_v50 = vmul.f32 %v2009_v9, %v1956_v58  ;;  %1059 = vrcp.f32 %v2017_v54  ;;  %v627_v27 = vsel %vm2011_vm11, %v1906_v8, %v623_v59  ;;  %v649_v49 = vadd.f32 %v1937_v34, %v648_v26  ;;  %vm2036_vm14 = vmor %vm650_vm12, %vm651_vm13 }
  0xa3   :  { %v654_v15 = vand.u32 2147483647, %v1882_v45  ;;  %v674_v13 = vmul.f32 %v1958_v28, %v673_v53  ;;  %v610_v48 = vmul.f32 %v609_v55, %v606_v38  ;;  %v657_v16 = vor.u32 1.1754944e-38, %v656_v62 }
  0xa4   :  { %v2032_v21 = vpop.eup %1057  ;;  %v2040_v17 = vadd.f32 1.0, %v1056_v33  ;;  %v824_v18 = vmul.f32 1.442695, %v823_v6  ;;  %vm676_vm15 = vweird.f32 %v1911_v36  ;;  %vm677_vm0 = vweird.f32 %v1958_v28 }
  0xa5   :  { %v680_v45 = vand.u32 2147483647, %v1911_v36  ;;  %v682_v8 = vand.u32 2147483648, %v1911_v36  ;;  %v632_v55 = vsel %vm1999_vm10, %v631_v5, %v627_v27  ;;  %v700_v4 = vmul.f32 %v1994_v19, %v699_v10  ;;  %vm2060_vm2 = vmor %vm676_vm15, %vm677_vm0 }
  0xa6   :  { %v725_v11 = vsub.f32 1.0, %v724_v50  ;;  %1061 = vrcp.f32 %v2040_v17  ;;  %v653_v20 = vsel %vm2036_vm14, %v1937_v34, %v649_v49  ;;  %vm655_vm1 = vcmp.eq.f32.partialorder %v654_v15, 8.507059e+37 }
  0xa7   :  { %v675_v12 = vadd.f32 %v1958_v28, %v674_v13  ;;  %v750_v61 = vmul.f32 %v2032_v21, %v1987_v43  ;;  %v611_v36 = vadd.f32 %v610_v48, %v585_v7  ;;  %vm702_vm3 = vweird.f32 %v1952_v40 }
  0xa8   :  { %v2058_v2 = vpop.eup %1059  ;;  %vm703_vm4 = vweird.f32 %v1994_v19  ;;  %1063 = vpow2.f32 %v824_v18  ;;  %v636_v34 = vmul.f32 %v635_v60, %v632_v55  ;;  %vm2068_vm5 = vcmp.eq.f32.partialorder %v680_v45, 8.507059e+37 }
  0xa9   :  { %v706_v32 = vand.u32 2147483647, %v1952_v40  ;;  %v708_v63 = vand.u32 2147483648, %v1952_v40  ;;  %v658_v37 = vsel %vm655_vm1, %v657_v16, %v653_v20  ;;  %v683_v46 = vor.u32 1.1754944e-38, %v682_v8  ;;  %vm2079_vm6 = vmor %vm702_vm3, %vm703_vm4 }
  0xaa   :  { %v701_v44 = vadd.f32 %v1994_v19, %v700_v4  ;;  %v726_v41 = vmul.f32 %v2009_v9, %v725_v11  ;;  %v679_v60 = vsel %vm2060_vm2, %v1958_v28, %v675_v12  ;;  %vm728_vm7 = vweird.f32 %v1956_v58 }
  0xab   :  { %v751_v0 = vsub.f32 1.0, %v750_v61  ;;  %v776_v40 = vmul.f32 %v2058_v2, %v2017_v54  ;;  %vm729_vm8 = vweird.f32 %v2009_v9  ;;  %v732_v42 = vand.u32 2147483647, %v1956_v58 }
  0xac   :  { %v2086_v35 = vpop.eup %1061  ;;  %v734_v3 = vand.u32 2147483648, %v1956_v58  ;;  %v847_v28 = vstv %s2042_s22  ;;  %v637_v51 = vadd.f32 %v636_v34, %v611_v36  ;;  %v662_v22 = vmul.f32 %v661_v25, %v658_v37  ;;  %vm2109_vm10 = vmor %vm728_vm7, %vm729_vm8 }
  0xad   :  { %vm2096_vm9 = vcmp.eq.f32.partialorder %v706_v32, 8.507059e+37  ;;  %v709_v47 = vor.u32 1.1754944e-38, %v708_v63  ;;  %v684_v59 = vsel %vm2068_vm5, %v683_v46, %v679_v60  ;;  %v705_v26 = vsel %vm2079_vm6, %v1994_v19, %v701_v44 }
  0xae   :  { %v1064_v52 = vpop.eup %1063  ;;  %v727_v53 = vadd.f32 %v2009_v9, %v726_v41  ;;  %v848_v1 = vmul.f32 %v1812_v57, %v847_v28  ;;  %v752_v30 = vmul.f32 %v2032_v21, %v751_v0  ;;  %v777_v62 = vsub.f32 1.0, %v776_v40 }
  0xaf   :  { %v802_v6 = vmul.f32 %v2086_v35, %v2040_v17  ;;  %v2116_v7 = vadd.f32 1.0, %v1064_v52  ;;  %vm2118_vm11 = vcmp.eq.f32.partialorder %v732_v42, 8.507059e+37  ;;  %v735_v38 = vor.u32 1.1754944e-38, %v734_v3 }
  0xb0   :  { %vm754_vm12 = vweird.f32 %v1987_v43  ;;  %v849_v57 = vsub.f32 0.0, %v848_v1  ;;  %v663_v58 = vadd.f32 %v662_v22, %v637_v51  ;;  %v688_v33 = vmul.f32 %v687_v56, %v684_v59 }
  0xb1   :  { %vm755_vm13 = vweird.f32 %v2032_v21  ;;  %1065 = vrcp.f32 %v2116_v7  ;;  %v710_v5 = vsel %vm2096_vm9, %v709_v47, %v705_v26  ;;  %v731_v10 = vsel %vm2109_vm10, %v2009_v9, %v727_v53 }
  0xb2   :  { %v758_v50 = vand.u32 2147483647, %v1987_v43  ;;  %v760_v27 = vand.u32 2147483648, %v1987_v43  ;;  %v753_v49 = vadd.f32 %v2032_v21, %v752_v30  ;;  %v778_v56 = vmul.f32 %v2058_v2, %v777_v62  ;;  %vm2141_vm14 = vmor %vm754_vm12, %vm755_vm13 }
  0xb3   :  { %v803_v15 = vsub.f32 1.0, %v802_v6  ;;  %v850_v13 = vmul.f32 1.442695, %v849_v57  ;;  %v739_v48 = vstv %s2091_s1  ;;  %vm780_vm15 = vweird.f32 %v2017_v54 }
  0xb4   :  { %v689_v9 = vadd.f32 %v688_v33, %v663_v58  ;;  %v714_v16 = vmul.f32 %v713_v31, %v710_v5  ;;  %vm781_vm0 = vweird.f32 %v2058_v2  ;;  %v736_v18 = vsel %vm2118_vm11, %v735_v38, %v731_v10 }
  0xb5   :  { %1067 = vpow2.f32 %v850_v13  ;;  %vm759_vm1 = vcmp.eq.f32.partialorder %v758_v50, 8.507059e+37  ;;  %v761_v43 = vor.u32 1.1754944e-38, %v760_v27  ;;  %v786_v45 = vand.u32 2147483648, %v2017_v54  ;;  %vm2163_vm2 = vmor %vm780_vm15, %vm781_vm0 }
  0xb6   :  { %v757_v55 = vsel %vm2141_vm14, %v2032_v21, %v753_v49  ;;  %v779_v4 = vadd.f32 %v2058_v2, %v778_v56  ;;  %v784_v11 = vand.u32 2147483647, %v2017_v54  ;;  %v804_v31 = vmul.f32 %v2086_v35, %v803_v15 }
  0xb7   :  { %v1066_v8 = vpop.eup %1065  ;;  %v765_v20 = vstv %s2123_s23  ;;  %v715_v36 = vadd.f32 %v714_v16, %v689_v9  ;;  %v740_v23 = vmul.f32 %v739_v48, %v736_v18  ;;  %vm806_vm3 = vweird.f32 %v2040_v17 }
  0xb8   :  { %v828_v61 = vmul.f32 %v1066_v8, %v2116_v7  ;;  %vm807_vm4 = vweird.f32 %v2086_v35  ;;  %v762_v21 = vsel %vm759_vm1, %v761_v43, %v757_v55  ;;  %v787_v34 = vor.u32 1.1754944e-38, %v786_v45 }
  0xb9   :  { %v812_v24 = vand.u32 2147483648, %v2040_v17  ;;  %v783_v63 = vsel %vm2163_vm2, %v2058_v2, %v779_v4  ;;  %vm785_vm5 = vcmp.eq.f32.partialorder %v784_v11, 8.507059e+37  ;;  %v805_v37 = vadd.f32 %v2086_v35, %v804_v31  ;;  %vm2179_vm6 = vmor %vm806_vm3, %vm807_vm4 }
  0xba   :  { %v829_v54 = vsub.f32 1.0, %v828_v61  ;;  %v810_v46 = vand.u32 2147483647, %v2040_v17  ;;  %v791_v44 = vstv %s2146_s2  ;;  %v741_v0 = vadd.f32 %v740_v23, %v715_v36 }
  0xbb   :  { %v1068_v32 = vpop.eup %1067  ;;  %v766_v40 = vmul.f32 %v765_v20, %v762_v21  ;;  %vm832_vm7 = vweird.f32 %v2116_v7  ;;  %vm833_vm8 = vweird.f32 %v1066_v8  ;;  %v788_v42 = vsel %vm785_vm5, %v787_v34, %v783_v63 }
  0xbc   :  { %v830_v60 = vmul.f32 %v1066_v8, %v829_v54  ;;  %v852_v39 = vadd.f32 1.0, %v1068_v32  ;;  %v813_v2 = vor.u32 1.1754944e-38, %v812_v24  ;;  %v838_v3 = vand.u32 2147483648, %v2116_v7  ;;  %vm834_vm10 = vmor %vm832_vm7, %vm833_vm8 }
  0xbd   :  { %v809_v17 = vsel %vm2179_vm6, %v2086_v35, %v805_v37  ;;  %vm811_vm9 = vcmp.eq.f32.partialorder %v810_v46, 8.507059e+37  ;;  %v836_v51 = vand.u32 2147483647, %v2116_v7  ;;  %v767_v22 = vadd.f32 %v766_v40, %v741_v0 }
  0xbe   :  { %1069 = vrcp.f32 %v852_v39  ;;  %v831_v28 = vadd.f32 %v1066_v8, %v830_v60  ;;  %v792_v29 = vmul.f32 %v791_v44, %v788_v42  ;;  %v814_v47 = vsel %vm811_vm9, %v813_v2, %v809_v17 }
  0xbf   :  { %v817_v52 = vstv %s2171_s24  ;;  %v839_v59 = vor.u32 1.1754944e-38, %v838_v3  ;;  %vm837_vm11 = vcmp.eq.f32.partialorder %v836_v51, 8.507059e+37  ;;  %v843_v6 = vstv %s938_s25 }
  0xc0   :  { %v835_v26 = vsel %vm834_vm10, %v1066_v8, %v831_v28  ;;  %v793_v1 = vadd.f32 %v792_v29, %v767_v22  ;;  %v818_v25 = vmul.f32 %v817_v52, %v814_v47  ;;  %v864_v35 = vand.u32 2147483648, %v852_v39 }
  0xc1   :  { %v840_v62 = vsel %vm837_vm11, %v839_v59, %v835_v26  ;;  %vm858_vm12 = vweird.f32 %v852_v39  ;;  %v862_v7 = vand.u32 2147483647, %v852_v39  ;;  %v869_v10 = vstv %s940_s26 }
  0xc2   :  { %v819_v38 = vadd.f32 %v818_v25, %v793_v1  ;;  %v844_v57 = vmul.f32 %v843_v6, %v840_v62  ;;  %v865_v33 = vor.u32 1.1754944e-38, %v864_v35 }
  0xc3   :  { %vm863_vm15 = vcmp.eq.f32.partialorder %v862_v7, 8.507059e+37 }
  0xc4   :  { %v1070_v53 = vpop.eup %1069  ;;  %v845_v50 = vadd.f32 %v844_v57, %v819_v38 }
  0xc5   :  { %v854_v30 = vmul.f32 %v1070_v53, %v852_v39  ;;  %vm859_vm13 = vweird.f32 %v1070_v53 }
  0xc6   :  { %vm860_vm14 = vmor %vm858_vm12, %vm859_vm13 }
  0xc7   :  { %v855_v19 = vsub.f32 1.0, %v854_v30 }
  0xc9   :  { %v856_v58 = vmul.f32 %v1070_v53, %v855_v19 }
  0xcb   :  { %v857_v5 = vadd.f32 %v1070_v53, %v856_v58 }
  0xcd   :  { %v861_v27 = vsel %vm860_vm14, %v1070_v53, %v857_v5 }
  0xce   :  { %v866_v49 = vsel %vm863_vm15, %v865_v33, %v861_v27 }
  0xcf   :  { %v870_v56 = vmul.f32 %v869_v10, %v866_v49 }
  0xd1   :  { %v871_v15 = vadd.f32 %v870_v56, %v845_v50 }
  0xd3   :  { %872 = vst [vmem:[%s2196_s3] sm:$0xff] %v871_v15 }
  0xd4   :  { %877 = vsyncpa [#allocation3], 1 }
  0xd5   :  { %878 = vsyncpa [#allocation5], 1 }

</bundles_post_ra>
